<compile_context>
chip_gen: v7x
topology: tpu7x:2x2x1
jax: 0.10.0
libtpu: 0.0.40
codegen_flags: <defaults>
</compile_context>

<pallas_src>
import functools
import math

import jax
import jax.numpy as jnp
from jax.experimental import pallas as pl
from jax.experimental.pallas import tpu as pltpu


# ---------------------------------------------------------------------------
# in-kernel helpers (fp32 math on the VPU/EUP)
# ---------------------------------------------------------------------------
def _layernorm_f32(x, gamma, beta, eps=1e-5):
    """LayerNorm over the last axis in fp32. x:(R,C), gamma/beta:(1,C)."""
    x = x.astype(jnp.float32)
    mu = jnp.mean(x, axis=-1, keepdims=True)
    xc = x - mu
    var = jnp.mean(xc * xc, axis=-1, keepdims=True)
    inv = jax.lax.rsqrt(var + eps)
    return xc * inv * gamma.astype(jnp.float32) + beta.astype(jnp.float32)


def _erf(x):
    """Abramowitz & Stegun 7.1.26 polynomial erf (|err| < 1.5e-7)."""
    a1, a2, a3, a4, a5 = 0.254829592, -0.284496736, 1.421413741, -1.453152027, 1.061405429
    p = 0.3275911
    ax = jnp.abs(x)
    t = 1.0 / (1.0 + p * ax)
    poly = ((((a5 * t + a4) * t + a3) * t + a2) * t + a1) * t
    y = 1.0 - poly * jnp.exp(-ax * ax)
    return jnp.where(x < 0, -y, y)


def _gelu(x, approx):
    if approx:
        # tanh approximation -> most of the cost lands on the EUP slot
        c = math.sqrt(2.0 / math.pi)
        return 0.5 * x * (1.0 + jnp.tanh(c * (x + 0.044715 * x * x * x)))
    # exact (erf) formulation, matches torch nn.GELU() to ~1e-7
    return 0.5 * x * (1.0 + _erf(x * (1.0 / math.sqrt(2.0))))


# ---------------------------------------------------------------------------
# fused Block kernel: (x + pos + y) -> LN -> MHSA -> +res -> LN -> MLP -> +res
# ---------------------------------------------------------------------------
def _block_kernel(x_ref, pos_ref, y_ref,
                  g1_ref, b1_ref, wq_ref, wk_ref, wv_ref, wp_ref, bp_ref,
                  g2_ref, b2_ref, w1_ref, bfc1_ref, w2_ref, bfc2_ref,
                  o_ref, *, num_heads, head_dim, compute_dtype,
                  approx_recip, approx_gelu):
    f32 = jnp.float32
    Bt, N, C = x_ref.shape
    H, D = num_heads, head_dim
    R = Bt * N
    G = Bt * H

    # residual base: x + pos + y (fp32)
    inp = (x_ref[...].astype(f32) + pos_ref[...].astype(f32)
           + y_ref[...].astype(f32)).reshape(R, C)

    # ------------------------- attention branch ---------------------------
    h = _layernorm_f32(inp, g1_ref[...], b1_ref[...])              # (R, C)
    hc = h.astype(compute_dtype)

    # q/k/v projections (qkv_bias=False); weights already in compute_dtype and
    # the 1/sqrt(D) scale is folded into w_q on the host.
    q = jnp.dot(hc, wq_ref[...], preferred_element_type=f32)       # (R, C)
    k = jnp.dot(hc, wk_ref[...], preferred_element_type=f32)
    v = jnp.dot(hc, wv_ref[...], preferred_element_type=f32)

    def to_heads(t):  # (R, C) -> (Bt*H, N, D); single collapsed batch dim
        return jnp.swapaxes(t.reshape(Bt, N, H, D), 1, 2).reshape(G, N, D)

    q = to_heads(q).astype(compute_dtype)
    k = to_heads(k).astype(compute_dtype)
    v = to_heads(v).astype(compute_dtype)

    # all (batch, head) pairs in one batched contraction -- no per-head loop,
    # no lane-misaligned slices / concatenates
    s = jnp.einsum("gnd,gmd->gnm", q, k, preferred_element_type=f32)  # (G,N,N)
    s_max = jnp.max(s, axis=-1, keepdims=True)
    p = jnp.exp(s - s_max)
    denom = jnp.sum(p, axis=-1, keepdims=True)
    p = p * pl.reciprocal(denom, approx=approx_recip)

    ctx = jnp.einsum("gnm,gmd->gnd", p.astype(compute_dtype), v,
                     preferred_element_type=f32)                    # (G, N, D)
    ctx = jnp.swapaxes(ctx.reshape(Bt, H, N, D), 1, 2).reshape(R, C)

    attn_out = jnp.dot(ctx.astype(compute_dtype), wp_ref[...],
                       preferred_element_type=f32) + bp_ref[...].astype(f32)
    h1 = inp + attn_out                                             # residual 1

    # ---------------------------- MLP branch ------------------------------
    h2 = _layernorm_f32(h1, g2_ref[...], b2_ref[...])
    z = jnp.dot(h2.astype(compute_dtype), w1_ref[...],
                preferred_element_type=f32) + bfc1_ref[...].astype(f32)
    z = _gelu(z, approx=approx_gelu)
    mlp_out = jnp.dot(z.astype(compute_dtype), w2_ref[...],
                      preferred_element_type=f32) + bfc2_ref[...].astype(f32)
    out = h1 + mlp_out                                              # residual 2

    o_ref[...] = out.reshape(Bt, N, C).astype(o_ref.dtype)


# ---------------------------------------------------------------------------
# wrappers
# ---------------------------------------------------------------------------
def _pick_batch_tile(B, N, target_rows=256):
    """Largest divisor Bt of B with Bt*N <= target_rows; prefer grid >= 2 steps
    (dual-TensorCore parts), fall back to the largest fitting divisor."""
    divisors = [d for d in range(1, B + 1) if B % d == 0]
    fits = [d for d in divisors if d * N <= max(target_rows, N)]
    if not fits:
        return 1
    multi = [d for d in fits if B // d >= 2]
    return max(multi) if multi else max(fits)


def _const_spec(shape):
    """Grid-invariant (weight) BlockSpec: single-buffered to save VMEM."""
    idx = lambda b: (0,) * len(shape)
    try:
        return pl.BlockSpec(shape, idx, pipeline_mode=pl.Buffered(1))
    except TypeError:
        return pl.BlockSpec(shape, idx)


def _vmem_budget_bytes(weights, Bt, N, C, hidden, H):
    """Explicit scoped-VMEM budget: single-buffered weights + double-buffered
    activation tiles + largest live fp32 intermediates, with headroom."""
    wbytes = sum(int(w.size) * w.dtype.itemsize for w in weights)
    act = 2 * 4 * Bt * N * C * 4                 # 2x buffers, x/pos/y/out tiles
    R, G, D = Bt * N, Bt * H, C // H
    inter = 4 * (6 * R * C + 2 * R * hidden + 2 * G * N * N + 3 * G * N * D)
    est = int(1.5 * (wbytes + act + inter))
    ceiling = 100 * 1024 * 1024                  # v5e/v6e have 128 MiB VMEM
    try:                                         # cap lower on 64 MiB parts
        info = pltpu.get_tpu_info()
        cap = getattr(info, "vmem_capacity_bytes", None)
        if cap:
            ceiling = min(ceiling, int(cap * 0.85))
    except Exception:
        pass
    return int(min(max(est, 32 * 1024 * 1024), ceiling))


def transformer_block_pallas(x, pos, y, blk_params, num_heads, *,
                             compute_dtype=jnp.float32, batch_tile=None,
                             target_rows=256):
    B, N, C = x.shape
    head_dim = C // num_heads
    scale = head_dim ** (-0.5)
    compute_dtype = jnp.dtype(compute_dtype)
    approx = compute_dtype != jnp.dtype(jnp.float32)
    f32 = jnp.float32

    (g1, b1, w_qkv, w_proj, b_proj, g2, b2, w_fc1, b_fc1, w_fc2, b_fc2) = blk_params
    hidden = w_fc1.shape[1]

    # host-side weight prep: split QKV, fold softmax scale into w_q, cast the
    # big matmul weights to compute_dtype (no per-operand casts in the kernel).
    w_q = (w_qkv[:, 0:C].astype(f32) * scale).astype(compute_dtype)
    w_k = w_qkv[:, C:2 * C].astype(compute_dtype)
    w_v = w_qkv[:, 2 * C:3 * C].astype(compute_dtype)
    w_p = w_proj.astype(compute_dtype)
    w_1 = w_fc1.astype(compute_dtype)
    w_2 = w_fc2.astype(compute_dtype)

    # LN params / biases stay fp32 (tiny; added to fp32 accumulators)
    weights = (g1.reshape(1, C).astype(f32), b1.reshape(1, C).astype(f32),
               w_q, w_k, w_v, w_p, b_proj.reshape(1, C).astype(f32),
               g2.reshape(1, C).astype(f32), b2.reshape(1, C).astype(f32),
               w_1, b_fc1.reshape(1, hidden).astype(f32),
               w_2, b_fc2.reshape(1, C).astype(f32))

    Bt = batch_tile or _pick_batch_tile(B, N, target_rows)
    assert B % Bt == 0, "batch tile must divide batch"
    grid = (B // Bt,)

    act_spec = pl.BlockSpec((Bt, N, C), lambda b: (b, 0, 0))
    w_specs = [_const_spec(w.shape) for w in weights]

    kernel = functools.partial(
        _block_kernel, num_heads=num_heads, head_dim=head_dim,
        compute_dtype=compute_dtype, approx_recip=approx, approx_gelu=approx)

    return pl.pallas_call(
        kernel,
        out_shape=jax.ShapeDtypeStruct((B, N, C), x.dtype),
        grid_spec=pltpu.PrefetchScalarGridSpec(
            num_scalar_prefetch=0,
            grid=grid,
            in_specs=[act_spec, act_spec, act_spec] + w_specs,
            out_specs=pl.BlockSpec((Bt, N, C), lambda b: (b, 0, 0)),
        ),
        compiler_params=pltpu.CompilerParams(
            dimension_semantics=("parallel",),
            vmem_limit_bytes=_vmem_budget_bytes(weights, Bt, N, C, hidden,
                                                num_heads)),
    )(x, pos, y, *weights)


def transformer_encoder_pallas(x, pos, y, params, num_heads, **kwargs):
    """forward(x, pos, y): for each block, x = block(x + pos + y)."""
    pos = jnp.broadcast_to(pos, x.shape).astype(x.dtype)
    y = jnp.broadcast_to(y, x.shape).astype(x.dtype)
    for blk in params:
        x = transformer_block_pallas(x, pos, y, blk, num_heads, **kwargs)
    return x


# ---------------------------------------------------------------------------
# plain-JAX reference (mirrors the PyTorch forward exactly)
# ---------------------------------------------------------------------------
def _layernorm_ref(x, gamma, beta, eps=1e-5):
    mu = jnp.mean(x, axis=-1, keepdims=True)
    var = jnp.mean((x - mu) ** 2, axis=-1, keepdims=True)
    return (x - mu) * jax.lax.rsqrt(var + eps) * gamma + beta


def transformer_encoder_reference(x, pos, y, params, num_heads):
    B, N, C = x.shape
    D = C // num_heads
    scale = D ** (-0.5)
    for (g1, b1, w_qkv, w_proj, b_proj, g2, b2, w_fc1, b_fc1, w_fc2, b_fc2) in params:
        inp = x + pos + y
        h = _layernorm_ref(inp, g1, b1)
        qkv = (h @ w_qkv).reshape(B, N, 3, num_heads, D).transpose(2, 0, 3, 1, 4)
        q, k, v = qkv[0], qkv[1], qkv[2]                      # (B, H, N, D)
        attn = jnp.einsum("bhnd,bhmd->bhnm", q, k) * scale
        attn = jax.nn.softmax(attn, axis=-1)
        ctx = jnp.einsum("bhnm,bhmd->bhnd", attn, v)
        ctx = ctx.transpose(0, 2, 1, 3).reshape(B, N, C)
        h1 = inp + (ctx @ w_proj + b_proj)
        h2 = _layernorm_ref(h1, g2, b2)
        z = jax.nn.gelu(h2 @ w_fc1 + b_fc1, approximate=False)
        x = h1 + (z @ w_fc2 + b_fc2)
    return x


# ---------------------------------------------------------------------------
if __name__ == "__main__":
    # small shapes consistent with the module (scaled-down ViT encoder)
    B, N, C, H, depth = 2, 8, 64, 8, 2
    hidden = int(C * 4.0)

    key = jax.random.PRNGKey(0)
    kx, kpos, ky, kp = jax.random.split(key, 4)
    x = jax.random.normal(kx, (B, N, C), dtype=jnp.float32)
    pos = jax.random.normal(kpos, (1, N, C), dtype=jnp.float32)
    y = jax.random.normal(ky, (B, N, C), dtype=jnp.float32)

    params = []
    for i in range(depth):
        ks = jax.random.split(jax.random.fold_in(kp, i), 8)
        g1 = 1.0 + 0.1 * jax.random.normal(ks[0], (C,), dtype=jnp.float32)
        b1 = 0.05 * jax.random.normal(ks[1], (C,), dtype=jnp.float32)
        w_qkv = jax.random.normal(ks[2], (C, 3 * C), dtype=jnp.float32) * (C ** -0.5)
        w_proj = jax.random.normal(ks[3], (C, C), dtype=jnp.float32) * (C ** -0.5)
        b_proj = 0.05 * jax.random.normal(ks[4], (C,), dtype=jnp.float32)
        g2 = 1.0 + 0.1 * jax.random.normal(ks[5], (C,), dtype=jnp.float32)
        b2 = 0.05 * jax.random.normal(ks[6], (C,), dtype=jnp.float32)
        kf = jax.random.split(ks[7], 4)
        w_fc1 = jax.random.normal(kf[0], (C, hidden), dtype=jnp.float32) * (C ** -0.5)
        b_fc1 = 0.05 * jax.random.normal(kf[1], (hidden,), dtype=jnp.float32)
        w_fc2 = jax.random.normal(kf[2], (hidden, C), dtype=jnp.float32) * (hidden ** -0.5)
        b_fc2 = 0.05 * jax.random.normal(kf[3], (C,), dtype=jnp.float32)
        params.append((g1, b1, w_qkv, w_proj, b_proj, g2, b2,
                       w_fc1, b_fc1, w_fc2, b_fc2))

    ref = transformer_encoder_reference(x, pos, y, params, H)

    # 1) fp32 compute path: tight correctness check
    out_f32 = transformer_encoder_pallas(x, pos, y, params, H,
                                         compute_dtype=jnp.float32)
    out_f32 = jax.block_until_ready(out_f32)
    assert out_f32.shape == (B, N, C)
    assert jnp.allclose(out_f32, ref, atol=2e-3, rtol=2e-3), "fp32 mismatch vs reference"

    # 2) bf16 compute path: activations stay fp32 at the kernel boundary; the
    #    big matmul weights are cast to bf16 on the host (halved weight DMA),
    #    MXU accumulation in fp32, approximate EUP reciprocal + tanh GELU.
    out_bf16 = transformer_encoder_pallas(x, pos, y, params, H,
                                          compute_dtype=jnp.bfloat16)
    out_bf16 = jax.block_until_ready(out_bf16)
    assert out_bf16.shape == (B, N, C)
    assert jnp.allclose(out_bf16.astype(jnp.float32), ref, atol=0.25, rtol=0.1), \
        "bf16 mismatch vs reference"

    # TODO(synk): stochastic Dropout/DropPath not implemented (rates are 0.0 ->
    # identity, matching the module defaults / eval semantics).
    print("KERNEL_OK")
</pallas_src>

<mosaic_0001>
module attributes {stable_mosaic.version = 11 : i64} {
  func.func @_block_kernel(%arg0: i32, %arg1: memref<1x8x64xf32, #tpu.memory_space<vmem>>, %arg2: memref<1x8x64xf32, #tpu.memory_space<vmem>>, %arg3: memref<1x8x64xf32, #tpu.memory_space<vmem>>, %arg4: memref<1x64xf32, #tpu.memory_space<vmem>>, %arg5: memref<1x64xf32, #tpu.memory_space<vmem>>, %arg6: memref<64x64xf32, #tpu.memory_space<vmem>>, %arg7: memref<64x64xf32, #tpu.memory_space<vmem>>, %arg8: memref<64x64xf32, #tpu.memory_space<vmem>>, %arg9: memref<64x64xf32, #tpu.memory_space<vmem>>, %arg10: memref<1x64xf32, #tpu.memory_space<vmem>>, %arg11: memref<1x64xf32, #tpu.memory_space<vmem>>, %arg12: memref<1x64xf32, #tpu.memory_space<vmem>>, %arg13: memref<64x256xf32, #tpu.memory_space<vmem>>, %arg14: memref<1x256xf32, #tpu.memory_space<vmem>>, %arg15: memref<256x64xf32, #tpu.memory_space<vmem>>, %arg16: memref<1x64xf32, #tpu.memory_space<vmem>>, %arg17: memref<1x8x64xf32, #tpu.memory_space<vmem>>) attributes {dimension_semantics = [#tpu.dimension_semantics<parallel>], iteration_bounds = array<i64: 2>, scalar_prefetch = 0 : i64, scratch_operands = 0 : i64, tpu.core_type = #tpu.core_type<tc>, window_params = [{transform_indices = @transform_0, window_bounds = array<i64: 1, 8, 64>}, {transform_indices = @transform_1, window_bounds = array<i64: 1, 8, 64>}, {transform_indices = @transform_2, window_bounds = array<i64: 1, 8, 64>}, {pipeline_mode = #tpu.pipeline_mode<synchronous>, transform_indices = @transform_3, window_bounds = array<i64: 1, 64>}, {pipeline_mode = #tpu.pipeline_mode<synchronous>, transform_indices = @transform_4, window_bounds = array<i64: 1, 64>}, {pipeline_mode = #tpu.pipeline_mode<synchronous>, transform_indices = @transform_5, window_bounds = array<i64: 64, 64>}, {pipeline_mode = #tpu.pipeline_mode<synchronous>, transform_indices = @transform_6, window_bounds = array<i64: 64, 64>}, {pipeline_mode = #tpu.pipeline_mode<synchronous>, transform_indices = @transform_7, window_bounds = array<i64: 64, 64>}, {pipeline_mode = #tpu.pipeline_mode<synchronous>, transform_indices = @transform_8, window_bounds = array<i64: 64, 64>}, {pipeline_mode = #tpu.pipeline_mode<synchronous>, transform_indices = @transform_9, window_bounds = array<i64: 1, 64>}, {pipeline_mode = #tpu.pipeline_mode<synchronous>, transform_indices = @transform_10, window_bounds = array<i64: 1, 64>}, {pipeline_mode = #tpu.pipeline_mode<synchronous>, transform_indices = @transform_11, window_bounds = array<i64: 1, 64>}, {pipeline_mode = #tpu.pipeline_mode<synchronous>, transform_indices = @transform_12, window_bounds = array<i64: 64, 256>}, {pipeline_mode = #tpu.pipeline_mode<synchronous>, transform_indices = @transform_13, window_bounds = array<i64: 1, 256>}, {pipeline_mode = #tpu.pipeline_mode<synchronous>, transform_indices = @transform_14, window_bounds = array<i64: 256, 64>}, {pipeline_mode = #tpu.pipeline_mode<synchronous>, transform_indices = @transform_15, window_bounds = array<i64: 1, 64>}, {transform_indices = @transform_16, window_bounds = array<i64: 1, 8, 64>}]} {
    %c0 = arith.constant 0 : index
    %c0_0 = arith.constant 0 : index
    %c0_1 = arith.constant 0 : index
    %0 = vector.load %arg1[%c0, %c0_0, %c0_1] : memref<1x8x64xf32, #tpu.memory_space<vmem>>, vector<1x8x64xf32>
    %c0_2 = arith.constant 0 : index
    %c0_3 = arith.constant 0 : index
    %c0_4 = arith.constant 0 : index
    %1 = vector.load %arg2[%c0_2, %c0_3, %c0_4] : memref<1x8x64xf32, #tpu.memory_space<vmem>>, vector<1x8x64xf32>
    %2 = arith.addf %0, %1 : vector<1x8x64xf32>
    %c0_5 = arith.constant 0 : index
    %c0_6 = arith.constant 0 : index
    %c0_7 = arith.constant 0 : index
    %3 = vector.load %arg3[%c0_5, %c0_6, %c0_7] : memref<1x8x64xf32, #tpu.memory_space<vmem>>, vector<1x8x64xf32>
    %4 = arith.addf %2, %3 : vector<1x8x64xf32>
    %5 = vector.shape_cast %4 : vector<1x8x64xf32> to vector<8x64xf32>
    %c0_8 = arith.constant 0 : index
    %c0_9 = arith.constant 0 : index
    %6 = vector.load %arg4[%c0_8, %c0_9] : memref<1x64xf32, #tpu.memory_space<vmem>>, vector<1x64xf32>
    %c0_10 = arith.constant 0 : index
    %c0_11 = arith.constant 0 : index
    %7 = vector.load %arg5[%c0_10, %c0_11] : memref<1x64xf32, #tpu.memory_space<vmem>>, vector<1x64xf32>
    %cst = arith.constant dense<0.000000e+00> : vector<8xf32>
    %8 = vector.multi_reduction <add>, %5, %cst [1] : vector<8x64xf32> to vector<8xf32>
    %9 = vector.shape_cast %8 : vector<8xf32> to vector<8x1xf32>
    %cst_12 = arith.constant 6.400000e+01 : f32
    %10 = vector.broadcast %cst_12 : f32 to vector<8x1xf32>
    %11 = arith.divf %9, %10 : vector<8x1xf32>
    %12 = vector.broadcast %11 : vector<8x1xf32> to vector<8x64xf32>
    %13 = arith.subf %5, %12 : vector<8x64xf32>
    %14 = arith.mulf %13, %13 : vector<8x64xf32>
    %cst_13 = arith.constant dense<0.000000e+00> : vector<8xf32>
    %15 = vector.multi_reduction <add>, %14, %cst_13 [1] : vector<8x64xf32> to vector<8xf32>
    %16 = vector.shape_cast %15 : vector<8xf32> to vector<8x1xf32>
    %cst_14 = arith.constant 6.400000e+01 : f32
    %17 = vector.broadcast %cst_14 : f32 to vector<8x1xf32>
    %18 = arith.divf %16, %17 : vector<8x1xf32>
    %cst_15 = arith.constant 9.99999974E-6 : f32
    %19 = vector.broadcast %cst_15 : f32 to vector<8x1xf32>
    %20 = arith.addf %18, %19 : vector<8x1xf32>
    %21 = math.rsqrt %20 : vector<8x1xf32>
    %22 = vector.broadcast %21 : vector<8x1xf32> to vector<8x64xf32>
    %23 = arith.mulf %13, %22 : vector<8x64xf32>
    %24 = vector.broadcast %6 : vector<1x64xf32> to vector<8x64xf32>
    %25 = arith.mulf %23, %24 : vector<8x64xf32>
    %26 = vector.broadcast %7 : vector<1x64xf32> to vector<8x64xf32>
    %27 = arith.addf %25, %26 : vector<8x64xf32>
    %c0_16 = arith.constant 0 : index
    %c0_17 = arith.constant 0 : index
    %28 = vector.load %arg6[%c0_16, %c0_17] : memref<64x64xf32, #tpu.memory_space<vmem>>, vector<64x64xf32>
    %cst_18 = arith.constant dense<0.000000e+00> : vector<8x64xf32>
    %29 = tpu.matmul %27, %28, %cst_18 {dimension_numbers = #tpu.dot_dimension_numbers<[1], [0], [0], [1], [0, 0, 1, 1], [], []>} : vector<8x64xf32>, vector<64x64xf32>, vector<8x64xf32> -> vector<8x64xf32>
    %c0_19 = arith.constant 0 : index
    %c0_20 = arith.constant 0 : index
    %30 = vector.load %arg7[%c0_19, %c0_20] : memref<64x64xf32, #tpu.memory_space<vmem>>, vector<64x64xf32>
    %cst_21 = arith.constant dense<0.000000e+00> : vector<8x64xf32>
    %31 = tpu.matmul %27, %30, %cst_21 {dimension_numbers = #tpu.dot_dimension_numbers<[1], [0], [0], [1], [0, 0, 1, 1], [], []>} : vector<8x64xf32>, vector<64x64xf32>, vector<8x64xf32> -> vector<8x64xf32>
    %c0_22 = arith.constant 0 : index
    %c0_23 = arith.constant 0 : index
    %32 = vector.load %arg8[%c0_22, %c0_23] : memref<64x64xf32, #tpu.memory_space<vmem>>, vector<64x64xf32>
    %cst_24 = arith.constant dense<0.000000e+00> : vector<8x64xf32>
    %33 = tpu.matmul %27, %32, %cst_24 {dimension_numbers = #tpu.dot_dimension_numbers<[1], [0], [0], [1], [0, 0, 1, 1], [], []>} : vector<8x64xf32>, vector<64x64xf32>, vector<8x64xf32> -> vector<8x64xf32>
    %34 = vector.shape_cast %29 : vector<8x64xf32> to vector<1x8x8x8xf32>
    %35 = tpu.transpose %34, [0, 2, 1, 3] : vector<1x8x8x8xf32> -> vector<1x8x8x8xf32>
    %36 = vector.shape_cast %35 : vector<1x8x8x8xf32> to vector<8x8x8xf32>
    %37 = vector.shape_cast %31 : vector<8x64xf32> to vector<1x8x8x8xf32>
    %38 = tpu.transpose %37, [0, 2, 1, 3] : vector<1x8x8x8xf32> -> vector<1x8x8x8xf32>
    %39 = vector.shape_cast %38 : vector<1x8x8x8xf32> to vector<8x8x8xf32>
    %40 = vector.shape_cast %33 : vector<8x64xf32> to vector<1x8x8x8xf32>
    %41 = tpu.transpose %40, [0, 2, 1, 3] : vector<1x8x8x8xf32> -> vector<1x8x8x8xf32>
    %42 = vector.shape_cast %41 : vector<1x8x8x8xf32> to vector<8x8x8xf32>
    "tpu.trace_start"() <{level = 10 : i32, message = "gnd,gmd->gnm"}> : () -> ()
    %cst_25 = arith.constant dense<0.000000e+00> : vector<8x8x8xf32>
    %43 = tpu.matmul %36, %39, %cst_25 {dimension_numbers = #tpu.dot_dimension_numbers<[2], [2], [1], [1], [0, 0, 0, 1, 1, 1], [0], [0]>} : vector<8x8x8xf32>, vector<8x8x8xf32>, vector<8x8x8xf32> -> vector<8x8x8xf32>
    "tpu.trace_stop"() : () -> ()
    %cst_26 = arith.constant dense<0xFF800000> : vector<8x8xf32>
    %44 = vector.multi_reduction <maximumf>, %43, %cst_26 [2] : vector<8x8x8xf32> to vector<8x8xf32>
    %45 = vector.shape_cast %44 : vector<8x8xf32> to vector<8x8x1xf32>
    %46 = vector.broadcast %45 : vector<8x8x1xf32> to vector<8x8x8xf32>
    %47 = arith.subf %43, %46 : vector<8x8x8xf32>
    %48 = math.exp %47 : vector<8x8x8xf32>
    %cst_27 = arith.constant dense<0.000000e+00> : vector<8x8xf32>
    %49 = vector.multi_reduction <add>, %48, %cst_27 [2] : vector<8x8x8xf32> to vector<8x8xf32>
    %50 = vector.shape_cast %49 : vector<8x8xf32> to vector<8x8x1xf32>
    %51 = tpu.reciprocal %50 : vector<8x8x1xf32> -> vector<8x8x1xf32>
    %52 = vector.broadcast %51 : vector<8x8x1xf32> to vector<8x8x8xf32>
    %53 = arith.mulf %48, %52 : vector<8x8x8xf32>
    "tpu.trace_start"() <{level = 10 : i32, message = "gnm,gmd->gnd"}> : () -> ()
    %cst_28 = arith.constant dense<0.000000e+00> : vector<8x8x8xf32>
    %54 = tpu.matmul %53, %42, %cst_28 {dimension_numbers = #tpu.dot_dimension_numbers<[2], [1], [1], [2], [0, 0, 0, 1, 1, 2], [0], [0]>} : vector<8x8x8xf32>, vector<8x8x8xf32>, vector<8x8x8xf32> -> vector<8x8x8xf32>
    "tpu.trace_stop"() : () -> ()
    %55 = vector.shape_cast %54 : vector<8x8x8xf32> to vector<1x8x8x8xf32>
    %56 = tpu.transpose %55, [0, 2, 1, 3] : vector<1x8x8x8xf32> -> vector<1x8x8x8xf32>
    %57 = vector.shape_cast %56 : vector<1x8x8x8xf32> to vector<8x64xf32>
    %c0_29 = arith.constant 0 : index
    %c0_30 = arith.constant 0 : index
    %58 = vector.load %arg9[%c0_29, %c0_30] : memref<64x64xf32, #tpu.memory_space<vmem>>, vector<64x64xf32>
    %cst_31 = arith.constant dense<0.000000e+00> : vector<8x64xf32>
    %59 = tpu.matmul %57, %58, %cst_31 {dimension_numbers = #tpu.dot_dimension_numbers<[1], [0], [0], [1], [0, 0, 1, 1], [], []>} : vector<8x64xf32>, vector<64x64xf32>, vector<8x64xf32> -> vector<8x64xf32>
    %c0_32 = arith.constant 0 : index
    %c0_33 = arith.constant 0 : index
    %60 = vector.load %arg10[%c0_32, %c0_33] : memref<1x64xf32, #tpu.memory_space<vmem>>, vector<1x64xf32>
    %61 = vector.broadcast %60 : vector<1x64xf32> to vector<8x64xf32>
    %62 = arith.addf %59, %61 : vector<8x64xf32>
    %63 = arith.addf %5, %62 : vector<8x64xf32>
    %c0_34 = arith.constant 0 : index
    %c0_35 = arith.constant 0 : index
    %64 = vector.load %arg11[%c0_34, %c0_35] : memref<1x64xf32, #tpu.memory_space<vmem>>, vector<1x64xf32>
    %c0_36 = arith.constant 0 : index
    %c0_37 = arith.constant 0 : index
    %65 = vector.load %arg12[%c0_36, %c0_37] : memref<1x64xf32, #tpu.memory_space<vmem>>, vector<1x64xf32>
    %cst_38 = arith.constant dense<0.000000e+00> : vector<8xf32>
    %66 = vector.multi_reduction <add>, %63, %cst_38 [1] : vector<8x64xf32> to vector<8xf32>
    %67 = vector.shape_cast %66 : vector<8xf32> to vector<8x1xf32>
    %cst_39 = arith.constant 6.400000e+01 : f32
    %68 = vector.broadcast %cst_39 : f32 to vector<8x1xf32>
    %69 = arith.divf %67, %68 : vector<8x1xf32>
    %70 = vector.broadcast %69 : vector<8x1xf32> to vector<8x64xf32>
    %71 = arith.subf %63, %70 : vector<8x64xf32>
    %72 = arith.mulf %71, %71 : vector<8x64xf32>
    %cst_40 = arith.constant dense<0.000000e+00> : vector<8xf32>
    %73 = vector.multi_reduction <add>, %72, %cst_40 [1] : vector<8x64xf32> to vector<8xf32>
    %74 = vector.shape_cast %73 : vector<8xf32> to vector<8x1xf32>
    %cst_41 = arith.constant 6.400000e+01 : f32
    %75 = vector.broadcast %cst_41 : f32 to vector<8x1xf32>
    %76 = arith.divf %74, %75 : vector<8x1xf32>
    %cst_42 = arith.constant 9.99999974E-6 : f32
    %77 = vector.broadcast %cst_42 : f32 to vector<8x1xf32>
    %78 = arith.addf %76, %77 : vector<8x1xf32>
    %79 = math.rsqrt %78 : vector<8x1xf32>
    %80 = vector.broadcast %79 : vector<8x1xf32> to vector<8x64xf32>
    %81 = arith.mulf %71, %80 : vector<8x64xf32>
    %82 = vector.broadcast %64 : vector<1x64xf32> to vector<8x64xf32>
    %83 = arith.mulf %81, %82 : vector<8x64xf32>
    %84 = vector.broadcast %65 : vector<1x64xf32> to vector<8x64xf32>
    %85 = arith.addf %83, %84 : vector<8x64xf32>
    %c0_43 = arith.constant 0 : index
    %c0_44 = arith.constant 0 : index
    %86 = vector.load %arg13[%c0_43, %c0_44] : memref<64x256xf32, #tpu.memory_space<vmem>>, vector<64x256xf32>
    %cst_45 = arith.constant dense<0.000000e+00> : vector<8x256xf32>
    %87 = tpu.matmul %85, %86, %cst_45 {dimension_numbers = #tpu.dot_dimension_numbers<[1], [0], [0], [1], [0, 0, 1, 1], [], []>} : vector<8x64xf32>, vector<64x256xf32>, vector<8x256xf32> -> vector<8x256xf32>
    %c0_46 = arith.constant 0 : index
    %c0_47 = arith.constant 0 : index
    %88 = vector.load %arg14[%c0_46, %c0_47] : memref<1x256xf32, #tpu.memory_space<vmem>>, vector<1x256xf32>
    %89 = vector.broadcast %88 : vector<1x256xf32> to vector<8x256xf32>
    %90 = arith.addf %87, %89 : vector<8x256xf32>
    %cst_48 = arith.constant 5.000000e-01 : f32
    %91 = vector.broadcast %cst_48 : f32 to vector<8x256xf32>
    %92 = arith.mulf %91, %90 : vector<8x256xf32>
    %cst_49 = arith.constant 0.707106769 : f32
    %93 = vector.broadcast %cst_49 : f32 to vector<8x256xf32>
    %94 = arith.mulf %90, %93 : vector<8x256xf32>
    %95 = math.absf %94 : vector<8x256xf32>
    %cst_50 = arith.constant 0.327591091 : f32
    %96 = vector.broadcast %cst_50 : f32 to vector<8x256xf32>
    %97 = arith.mulf %96, %95 : vector<8x256xf32>
    %cst_51 = arith.constant 1.000000e+00 : f32
    %98 = vector.broadcast %cst_51 : f32 to vector<8x256xf32>
    %99 = arith.addf %98, %97 : vector<8x256xf32>
    %cst_52 = arith.constant 1.000000e+00 : f32
    %100 = vector.broadcast %cst_52 : f32 to vector<8x256xf32>
    %101 = arith.divf %100, %99 : vector<8x256xf32>
    %cst_53 = arith.constant 1.06140542 : f32
    %102 = vector.broadcast %cst_53 : f32 to vector<8x256xf32>
    %103 = arith.mulf %102, %101 : vector<8x256xf32>
    %cst_54 = arith.constant -1.45315206 : f32
    %104 = vector.broadcast %cst_54 : f32 to vector<8x256xf32>
    %105 = arith.addf %103, %104 : vector<8x256xf32>
    %106 = arith.mulf %105, %101 : vector<8x256xf32>
    %cst_55 = arith.constant 1.42141378 : f32
    %107 = vector.broadcast %cst_55 : f32 to vector<8x256xf32>
    %108 = arith.addf %106, %107 : vector<8x256xf32>
    %109 = arith.mulf %108, %101 : vector<8x256xf32>
    %cst_56 = arith.constant -0.284496725 : f32
    %110 = vector.broadcast %cst_56 : f32 to vector<8x256xf32>
    %111 = arith.addf %109, %110 : vector<8x256xf32>
    %112 = arith.mulf %111, %101 : vector<8x256xf32>
    %cst_57 = arith.constant 0.254829586 : f32
    %113 = vector.broadcast %cst_57 : f32 to vector<8x256xf32>
    %114 = arith.addf %112, %113 : vector<8x256xf32>
    %115 = arith.mulf %114, %101 : vector<8x256xf32>
    %cst_58 = arith.constant 0.000000e+00 : f32
    %116 = vector.broadcast %cst_58 : f32 to vector<8x256xf32>
    %117 = arith.subf %116, %95 : vector<8x256xf32>
    %118 = arith.mulf %117, %95 : vector<8x256xf32>
    %119 = math.exp %118 : vector<8x256xf32>
    %120 = arith.mulf %115, %119 : vector<8x256xf32>
    %cst_59 = arith.constant 1.000000e+00 : f32
    %121 = vector.broadcast %cst_59 : f32 to vector<8x256xf32>
    %122 = arith.subf %121, %120 : vector<8x256xf32>
    %cst_60 = arith.constant 0.000000e+00 : f32
    %123 = vector.broadcast %cst_60 : f32 to vector<8x256xf32>
    %124 = arith.cmpf olt, %94, %123 : vector<8x256xf32>
    %cst_61 = arith.constant 0.000000e+00 : f32
    %125 = vector.broadcast %cst_61 : f32 to vector<8x256xf32>
    %126 = arith.subf %125, %122 : vector<8x256xf32>
    %127 = arith.select %124, %126, %122 : vector<8x256xi1>, vector<8x256xf32>
    %cst_62 = arith.constant 1.000000e+00 : f32
    %128 = vector.broadcast %cst_62 : f32 to vector<8x256xf32>
    %129 = arith.addf %128, %127 : vector<8x256xf32>
    %130 = arith.mulf %92, %129 : vector<8x256xf32>
    %c0_63 = arith.constant 0 : index
    %c0_64 = arith.constant 0 : index
    %131 = vector.load %arg15[%c0_63, %c0_64] : memref<256x64xf32, #tpu.memory_space<vmem>>, vector<256x64xf32>
    %cst_65 = arith.constant dense<0.000000e+00> : vector<8x64xf32>
    %132 = tpu.matmul %130, %131, %cst_65 {dimension_numbers = #tpu.dot_dimension_numbers<[1], [0], [0], [1], [0, 0, 1, 1], [], []>} : vector<8x256xf32>, vector<256x64xf32>, vector<8x64xf32> -> vector<8x64xf32>
    %c0_66 = arith.constant 0 : index
    %c0_67 = arith.constant 0 : index
    %133 = vector.load %arg16[%c0_66, %c0_67] : memref<1x64xf32, #tpu.memory_space<vmem>>, vector<1x64xf32>
    %134 = vector.broadcast %133 : vector<1x64xf32> to vector<8x64xf32>
    %135 = arith.addf %132, %134 : vector<8x64xf32>
    %136 = arith.addf %63, %135 : vector<8x64xf32>
    %137 = vector.shape_cast %136 : vector<8x64xf32> to vector<1x8x64xf32>
    %c0_68 = arith.constant 0 : index
    %c0_69 = arith.constant 0 : index
    %c0_70 = arith.constant 0 : index
    %138 = vector.load %arg17[%c0_68, %c0_69, %c0_70] : memref<1x8x64xf32, #tpu.memory_space<vmem>>, vector<1x8x64xf32>
    tpu.vector_store %arg17[%c0_68, %c0_69, %c0_70], %137 {strides = array<i32>} : memref<1x8x64xf32, #tpu.memory_space<vmem>>, vector<1x8x64xf32>,
    return
  }
  func.func @transform_0(%arg0: i32) -> (i32, i32, i32) {
    %c0_i32 = arith.constant 0 : i32
    %c0_i32_0 = arith.constant 0 : i32
    %c0_i32_1 = arith.constant 0 : i32
    return %arg0, %c0_i32, %c0_i32_0 : i32, i32, i32
  }
  func.func @transform_1(%arg0: i32) -> (i32, i32, i32) {
    %c0_i32 = arith.constant 0 : i32
    %c0_i32_0 = arith.constant 0 : i32
    %c0_i32_1 = arith.constant 0 : i32
    return %arg0, %c0_i32, %c0_i32_0 : i32, i32, i32
  }
  func.func @transform_2(%arg0: i32) -> (i32, i32, i32) {
    %c0_i32 = arith.constant 0 : i32
    %c0_i32_0 = arith.constant 0 : i32
    %c0_i32_1 = arith.constant 0 : i32
    return %arg0, %c0_i32, %c0_i32_0 : i32, i32, i32
  }
  func.func @transform_3(%arg0: i32) -> (i32, i32) {
    %c0_i32 = arith.constant 0 : i32
    %c0_i32_0 = arith.constant 0 : i32
    %c0_i32_1 = arith.constant 0 : i32
    return %c0_i32, %c0_i32_0 : i32, i32
  }
  func.func @transform_4(%arg0: i32) -> (i32, i32) {
    %c0_i32 = arith.constant 0 : i32
    %c0_i32_0 = arith.constant 0 : i32
    %c0_i32_1 = arith.constant 0 : i32
    return %c0_i32, %c0_i32_0 : i32, i32
  }
  func.func @transform_5(%arg0: i32) -> (i32, i32) {
    %c0_i32 = arith.constant 0 : i32
    %c0_i32_0 = arith.constant 0 : i32
    %c0_i32_1 = arith.constant 0 : i32
    return %c0_i32, %c0_i32_0 : i32, i32
  }
  func.func @transform_6(%arg0: i32) -> (i32, i32) {
    %c0_i32 = arith.constant 0 : i32
    %c0_i32_0 = arith.constant 0 : i32
    %c0_i32_1 = arith.constant 0 : i32
    return %c0_i32, %c0_i32_0 : i32, i32
  }
  func.func @transform_7(%arg0: i32) -> (i32, i32) {
    %c0_i32 = arith.constant 0 : i32
    %c0_i32_0 = arith.constant 0 : i32
    %c0_i32_1 = arith.constant 0 : i32
    return %c0_i32, %c0_i32_0 : i32, i32
  }
  func.func @transform_8(%arg0: i32) -> (i32, i32) {
    %c0_i32 = arith.constant 0 : i32
    %c0_i32_0 = arith.constant 0 : i32
    %c0_i32_1 = arith.constant 0 : i32
    return %c0_i32, %c0_i32_0 : i32, i32
  }
  func.func @transform_9(%arg0: i32) -> (i32, i32) {
    %c0_i32 = arith.constant 0 : i32
    %c0_i32_0 = arith.constant 0 : i32
    %c0_i32_1 = arith.constant 0 : i32
    return %c0_i32, %c0_i32_0 : i32, i32
  }
  func.func @transform_10(%arg0: i32) -> (i32, i32) {
    %c0_i32 = arith.constant 0 : i32
    %c0_i32_0 = arith.constant 0 : i32
    %c0_i32_1 = arith.constant 0 : i32
    return %c0_i32, %c0_i32_0 : i32, i32
  }
  func.func @transform_11(%arg0: i32) -> (i32, i32) {
    %c0_i32 = arith.constant 0 : i32
    %c0_i32_0 = arith.constant 0 : i32
    %c0_i32_1 = arith.constant 0 : i32
    return %c0_i32, %c0_i32_0 : i32, i32
  }
  func.func @transform_12(%arg0: i32) -> (i32, i32) {
    %c0_i32 = arith.constant 0 : i32
    %c0_i32_0 = arith.constant 0 : i32
    %c0_i32_1 = arith.constant 0 : i32
    return %c0_i32, %c0_i32_0 : i32, i32
  }
  func.func @transform_13(%arg0: i32) -> (i32, i32) {
    %c0_i32 = arith.constant 0 : i32
    %c0_i32_0 = arith.constant 0 : i32
    %c0_i32_1 = arith.constant 0 : i32
    return %c0_i32, %c0_i32_0 : i32, i32
  }
  func.func @transform_14(%arg0: i32) -> (i32, i32) {
    %c0_i32 = arith.constant 0 : i32
    %c0_i32_0 = arith.constant 0 : i32
    %c0_i32_1 = arith.constant 0 : i32
    return %c0_i32, %c0_i32_0 : i32, i32
  }
  func.func @transform_15(%arg0: i32) -> (i32, i32) {
    %c0_i32 = arith.constant 0 : i32
    %c0_i32_0 = arith.constant 0 : i32
    %c0_i32_1 = arith.constant 0 : i32
    return %c0_i32, %c0_i32_0 : i32, i32
  }
  func.func @transform_16(%arg0: i32) -> (i32, i32, i32) {
    %c0_i32 = arith.constant 0 : i32
    %c0_i32_0 = arith.constant 0 : i32
    %c0_i32_1 = arith.constant 0 : i32
    return %arg0, %c0_i32, %c0_i32_0 : i32, i32, i32
  }
}

</mosaic_0001>

<bundles_post_ra>
// kernel: tpu_custom_call.1
= control target key start
LH: loop header
LB: loop body
LE: loop exit
PB: predicated region body
PF: predicated region fallthrough
CT: control target
= control target key end

     0   :  { %s5584_s0 = inlined_call_operand.hbm [shape: f32[2,8,64], index: 0, kind: input, shape index: {}]   ;;  %s5585_s1 = inlined_call_operand.hbm [shape: f32[2,8,64], index: 1, kind: input, shape index: {}]   ;;  %s5586_s2 = inlined_call_operand.hbm [shape: f32[2,8,64], index: 2, kind: input, shape index: {}]   ;;  %s5587_s3 = inlined_call_operand.vmem [shape: f32[1,64], index: 3, kind: input, shape index: {}]   ;;  %s5588_s4 = inlined_call_operand.vmem [shape: f32[1,64], index: 4, kind: input, shape index: {}]   ;;  %s5589_s5 = inlined_call_operand.vmem [shape: f32[64,64], index: 5, kind: input, shape index: {}]   ;;  %s5590_s6 = inlined_call_operand.vmem [shape: f32[64,64], index: 6, kind: input, shape index: {}]   ;;  %s5591_s7 = inlined_call_operand.vmem [shape: f32[64,64], index: 7, kind: input, shape index: {}]   ;;  %s5592_s8 = inlined_call_operand.vmem [shape: f32[64,64], index: 8, kind: input, shape index: {}]   ;;  %s5593_s9 = inlined_call_operand.vmem [shape: f32[1,64], index: 9, kind: input, shape index: {}]   ;;  %s5594_s10 = inlined_call_operand.vmem [shape: f32[1,64], index: 10, kind: input, shape index: {}]   ;;  %s5595_s11 = inlined_call_operand.vmem [shape: f32[1,64], index: 11, kind: input, shape index: {}]   ;;  %s5596_s12 = inlined_call_operand.vmem [shape: f32[64,256], index: 12, kind: input, shape index: {}]   ;;  %s5597_s13 = inlined_call_operand.vmem [shape: f32[1,256], index: 13, kind: input, shape index: {}]   ;;  %s5598_s14 = inlined_call_operand.vmem [shape: f32[256,64], index: 14, kind: input, shape index: {}]   ;;  %s5599_s15 = inlined_call_operand.vmem [shape: f32[1,64], index: 15, kind: input, shape index: {}]   ;;  %s5600_s16 = inlined_call_operand.hbm [shape: f32[2,8,64], index: 16, kind: output, shape index: {}]  }
   0x1   :  { %5617 = sst [smem:[#allocation19_spill]] %s5584_s0 }
   0x2   :  { %5618 = sst [smem:[#allocation20_spill]] %s5585_s1 }
   0x3   :  { %5619 = sst [smem:[#allocation21_spill]] %s5594_s10 }
   0x4   :  { %5620 = sst [smem:[#allocation22_spill]] %s5595_s11 }
   0x5   :  { %5621 = sst [smem:[#allocation23_spill]] %s5597_s13 }
   0x6   :  { %5622 = sst [smem:[#allocation24_spill]] %s5598_s14 }
   0x7   :  { %5623 = sst [smem:[#allocation25_spill]] %s5599_s15 }
   0x8   :  { %5624 = sst [smem:[#allocation26_spill]] %s5600_s16 }
   0x9   :  { %21 = vsyncpa [#allocation3], 0 }
   0xa   :  { %23 = vsyncpa [#allocation3 + $0x1], 0 }
   0xb   :  { %24 = vsyncpa [#allocation6], 0 }
   0xc   :  { %26 = vsyncpa [#allocation6 + $0x1], 0 }
   0xd   :  { %27 = vsyncpa [#allocation4], 0 }
   0xe   :  { %29 = vsyncpa [#allocation4 + $0x1], 0  ;;  %s4698_s21 = smov 0   ;;  %s4700_s22 = smov 0  }
   0xf   :  { %s4702_s23 = smov 0   ;;  %s4704_s24 = smov 0  }
  0x10 LB: > { %5625 = sst [smem:[#allocation12_spill]] %s4576_s21  ;;  %s4719_s25 = sadd.s32 4294967295, %s4588_s24   ;;  %s4588_s24 = sphi %s4704_s24, %s5660_s24   ;;  %s4584_s23 = sphi %s4702_s23, %s5662_s23   ;;  %s4580_s22 = sphi %s4700_s22, %s5664_s22   ;;  %s4576_s21 = sphi %s4698_s21, %s5663_s21  }
  0x11   : > { %5626 = sst [smem:[#allocation13_spill]] %s4584_s23  ;;  %s3869_s26 = sadd.s32 4294967294, %s4588_s24  }
  0x12   : > { %5627 = sst [smem:[#allocation14_spill]] %s4588_s24  ;;  %s4723_s27 = sadd.s32 1, %s4588_s24  }
  0x13   : > { %5628 = sst [smem:[#allocation15_spill]] %s4723_s27  ;;  %s42_s28 = sadd.s32 1, %s4584_s23 }
  0x14   : > { %s39_s29 = ssub.s32 %s4588_s24, %s4723_s27  ;;  %p49_p0 = scmp.ne.s32.totalorder %s4584_s23, %s4580_s22 }
  0x15   : > { %p40_p1 = scmp.eq.s32.totalorder %s39_s29, 0  ;;  %p50_p2 = scmp.eq.s32.totalorder %s4588_s24, 0 }
  0x16   : > { %p55_p3 = scmp.ne.s32.totalorder %s4580_s22, %s4576_s21  ;;  %p56_p4 = scmp.eq.s32.totalorder %s4719_s25, 0 }
  0x17   : > { %s4735_s30 = scalar_select %p40_p1, %s4584_s23, %s42_s28  }
  0x18   : > { %p51_p5 = por %p50_p2, %p49_p0  ;;  %p4737_p6 = por %p56_p4, %p55_p3 }
  0x19   : > { %5629 = sst [smem:[#allocation16_spill]] %s4735_s30  ;;  %p404_p7 = scmp.eq.s32.totalorder %s4719_s25, 1 }
  0x1a   : > { %s5630_s0 = scalar_select %p4737_p6, 1, 0 }
  0x1b   : > { %p410_p8 = scmp.eq.s32.totalorder %s3869_s26, 1  ;;  %p4331_p10 = scmp.lt.s32.totalorder %s4588_s24, 2 }
  0x1c   : > { %p4744_p11 = por %p404_p7, %p49_p0  ;;  %s5607_s19 = sand.u32 1, %s4584_s23  }
  0x1d   : > { %p4748_p12 = por %p410_p8, %p55_p3  ;;  %s4754_s20 = sshll.u32 %s4588_s24, 7 }
  0x1e   : > { %s5631_s17 = scalar_select %p4744_p11, 1, 0 }
  0x1f   : > { %s5633_s18 = scalar_select %p4748_p12, 1, 0 }
  0x20   : > { %5632 = sst [smem:[#allocation17_spill]] %s5631_s17  ;;  %s4758_s28 = sshll.u32 %s5607_s19, 3 }
  0x21   : > { %5634 = sst [smem:[#allocation18_spill]] %s5633_s18  ;;  %p4760_p13 = pnand %p4331_p10, %p51_p5 }
  0x22   : > { %s487_s29 = sand.u32 1, %s4588_s24   ;;  %s5636_s1 = sld [smem:[#allocation20_spill]] }
  0x23   : > { %s5635_s26 = scalar_select %p4760_p13, 1, 0 }
  0x24   : > { %s491_s18 = scalar_lea.vmem [#allocation5], %s4758_s28  ;;  %s4775_s19 = scalar_lea.sflag [#allocation6], %s487_s29 }
  0x25   : > { %s498_s16 = sshll.u32 %s491_s18, 4  ;;  %p4781_p2 = pneg %p4760_p13  ;;  %s4772_s16 = int_to_ptr.vmem [resolvable:$true] %s498_s16 }
  0x28   : > { %s4769_s21 = scalar_lea.hbm %s5636_s1, %s4754_s20  ;;  %s4433_s18 = scalar_lea.hbm %s5636_s1, 256 }
  0x29   : > { %s4428_s15 = scalar_lea.hbm %s4769_s21, 128  ;;  %p4434_p5 = scmp.lt.u32.totalorder %s4769_s21, %s5636_s1 }
  0x2a   : > { %p4429_p1 = scmp.ne.s32.totalorder %s4769_s21, %s4428_s15  ;;  %p4435_p7 = scmp.lt.u32.totalorder %s4433_s18, %s4428_s15 }
  0x2b   : > { %p4437_p10 = scmp.lt.u32.totalorder %s4428_s15, %s4769_s21 }
  0x2c   : > { %p4431_p3 = pnand %p4781_p2, %p4429_p1  ;;  %p4436_p8 = por %p4435_p7, %p4434_p5 }
  0x2e   : > { %p4432_p4 = pneg %p4431_p3  ;;  %p4438_p9 = por %p4437_p10, %p4436_p8 }
  0x30   : > { %p4439_p0 = pnand %p4438_p9, %p4432_p4 }
  0x32   : > { %4442 = shalt.err (!%p4439_p0)
}
  0x33   : > { %s4443_s29 = scalar_lea.vmem %s4772_s16, 128  ;;  %s4590_s27 = smov [#allocation5]  }
  0x34   : > { %p4444_p1 = scmp.ne.s32.totalorder %s4772_s16, %s4443_s29  ;;  %s4448_s30 = sshll.u32 %s4590_s27, 4  ;;  %s4449_s30 = int_to_ptr.vmem [resolvable:$false] %s4448_s30 }
  0x35   : > { %s4450_s13 = scalar_lea.vmem %s4449_s30, 256  ;;  %p4451_p11 = scmp.lt.s32.totalorder %s4772_s16, %s4449_s30 }
  0x36   : > { %p4446_p3 = pnand %p4444_p1, %p4781_p2  ;;  %p4452_p6 = scmp.lt.s32.totalorder %s4450_s13, %s4443_s29 }
  0x38   : > { %p4447_p12 = pneg %p4446_p3  ;;  %p4453_p5 = por %p4452_p6, %p4451_p11 }
  0x3a   : > { %p4454_p7 = pnand %p4453_p5, %p4447_p12 }
  0x3c   : > { %4457 = shalt.err (!%p4454_p7)
}
  0x3d   : > { %4323 = dma.hbm_to_vmem [thread:$0]  (!%p4760_p13), %s4769_s21, 128, %s4772_s16, %s4775_s19  }
  0x3e   : > { %p521_p9 = scmp.lt.s32.totalorder %s4588_s24, 3  ;;  %s5638_s18 = sld [smem:[#allocation19_spill]] }
  0x3f   : > { %p5639_p6 = scmp.ge.s32.totalorder %s4588_s24, 1  ;;  %s473_s30 = scalar_lea.vmem [#allocation2], %s4758_s28 }
  0x40   : > { %s480_s13 = sshll.u32 %s473_s30, 4  ;;  %s5641_s1 = sand.u32 1, %s4584_s23   ;;  %s481_s13 = int_to_ptr.vmem [resolvable:$true] %s480_s13 }
  0x41   : > { %p4814_p11 = pnand %p5639_p6, %p521_p9  ;;  %s470_s16 = scalar_lea.sflag [#allocation3], %s5641_s1 }
  0x43   : > { %s5640_s27 = scalar_select %p4814_p11, 1, 0 }
  0x44   : > { %s4810_s29 = scalar_lea.hbm %s5638_s18, %s4754_s20  ;;  %s4463_s24 = scalar_lea.hbm %s5638_s18, 256 }
  0x45   : > { %s4458_s21 = scalar_lea.hbm %s4810_s29, 128  ;;  %p4464_p8 = scmp.lt.u32.totalorder %s4810_s29, %s5638_s18 }
  0x46   : > { %p4459_p12 = scmp.ne.s32.totalorder %s4810_s29, %s4458_s21  ;;  %p4465_p10 = scmp.lt.u32.totalorder %s4463_s24, %s4458_s21 }
  0x47   : > { %p4467_p3 = scmp.lt.u32.totalorder %s4458_s21, %s4810_s29 }
  0x48   : > { %p4461_p0 = pnand %p4459_p12, %p4781_p2  ;;  %p4466_p1 = por %p4465_p10, %p4464_p8 }
  0x4a   : > { %p4462_p4 = pneg %p4461_p0  ;;  %p4468_p5 = por %p4467_p3, %p4466_p1 }
  0x4c   : > { %p4469_p7 = pnand %p4468_p5, %p4462_p4 }
  0x4e   : > { %4472 = shalt.err (!%p4469_p7)
}
  0x4f   : > { %s4473_s1 = scalar_lea.vmem %s481_s13, 128  ;;  %s4591_s30 = smov [#allocation2]  }
  0x50   : > { %p4474_p9 = scmp.ne.s32.totalorder %s481_s13, %s4473_s1  ;;  %s4478_s23 = sshll.u32 %s4591_s30, 4  ;;  %s4479_s23 = int_to_ptr.vmem [resolvable:$false] %s4478_s23 }
  0x51   : > { %s4480_s14 = scalar_lea.vmem %s4479_s23, 256  ;;  %p4481_p0 = scmp.lt.s32.totalorder %s481_s13, %s4479_s23 }
  0x52   : > { %p4476_p6 = pnand %p4474_p9, %p4781_p2  ;;  %p4482_p11 = scmp.lt.s32.totalorder %s4480_s14, %s4473_s1 }
  0x54   : > { %p4477_p12 = pneg %p4476_p6  ;;  %p4483_p13 = por %p4482_p11, %p4481_p0 }
  0x56   : > { %p4484_p8 = pnand %p4483_p13, %p4477_p12 }
  0x58   : > { %4487 = shalt.err (!%p4484_p8)
}
  0x59   : > { %p5642_p10 = scmp.ne.s32.totalorder %s5635_s26, 0  ;;  %s4842_s24 = scalar_lea.hbm %s5586_s2, %s4754_s20 }
  0x5a   : > { %s509_s23 = scalar_lea.vmem [#allocation7], %s4758_s28  ;;  %s4488_s15 = scalar_lea.hbm %s4842_s24, 128 }
  0x5b   : > { %4320 = dma.hbm_to_vmem [thread:$0]  (!%p5642_p10), %s4810_s29, 128, %s481_s13, %s470_s16  }
  0x5c   : > { %s516_s21 = sshll.u32 %s509_s23, 4  ;;  %p4489_p13 = scmp.ne.s32.totalorder %s4842_s24, %s4488_s15  ;;  %s517_s21 = int_to_ptr.vmem [resolvable:$true] %s516_s21 }
  0x5d   : > { %s4493_s29 = scalar_lea.hbm %s5586_s2, 256  ;;  %p4494_p1 = scmp.lt.u32.totalorder %s4842_s24, %s5586_s2 }
  0x5e   : > { %p4491_p11 = pnand %p4489_p13, %p4781_p2  ;;  %p4495_p3 = scmp.lt.u32.totalorder %s4493_s29, %s4488_s15 }
  0x5f   : > { %p4497_p7 = scmp.lt.u32.totalorder %s4488_s15, %s4842_s24 }
  0x60   : > { %p4492_p4 = pneg %p4491_p11  ;;  %p4496_p5 = por %p4495_p3, %p4494_p1 }
  0x62   : > { %p4498_p9 = por %p4497_p7, %p4496_p5 }
  0x64   : > { %p4499_p6 = pnand %p4498_p9, %p4492_p4 }
  0x66   : > { %4502 = shalt.err (!%p4499_p6)
}
  0x67   : > { %s4503_s20 = scalar_lea.vmem %s517_s21, 128  ;;  %s4592_s28 = smov [#allocation7]  }
  0x68   : > { %p4504_p12 = scmp.ne.s32.totalorder %s517_s21, %s4503_s20  ;;  %s4508_s14 = sshll.u32 %s4592_s28, 4  ;;  %s4509_s14 = int_to_ptr.vmem [resolvable:$false] %s4508_s14 }
  0x69   : > { %s4510_s10 = scalar_lea.vmem %s4509_s14, 256  ;;  %p4511_p13 = scmp.lt.s32.totalorder %s517_s21, %s4509_s14 }
  0x6a   : > { %p4506_p0 = pnand %p4504_p12, %p4781_p2  ;;  %p4512_p11 = scmp.lt.s32.totalorder %s4510_s10, %s4503_s20 }
  0x6c   : > { %p4507_p8 = pneg %p4506_p0  ;;  %p4513_p10 = por %p4512_p11, %p4511_p13 }
  0x6e   : > { %p4514_p1 = pnand %p4513_p10, %p4507_p8 }
  0x70   : > { %4517 = shalt.err (!%p4514_p1)
}
  0x71   : > { %p5643_p3 = scmp.ne.s32.totalorder %s5635_s26, 0  ;;  %p5644_p4 = scmp.ne.s32.totalorder %s5640_s27, 0 }
  0x72   : > { %s4866_s17 = sand.u32 (!%p5644_p4), 1, %s4580_s22   ;;  %p5645_p2 = scmp.ne.s32.totalorder (!%p5644_p4), %s5630_s0, 0 }
  0x73   : > { %4326 = dma.hbm_to_vmem [thread:$0]  (!%p5643_p3), %s4842_s24, 128, %s517_s21, %s4775_s19  }
  0x74   : > { %525 = sbr.rel (%p5644_p4) target bundleno = 2805 (0xaf5), region = 84  ;;  %s4869_s11 = sshll.u32 (!%p5644_p4), %s4866_s17, 3 }
  0x75   : > { %s528_s23 = scalar_lea.sflag (!%p5644_p4), [#allocation3], %s4866_s17  ;;  %s531_s15 = scalar_lea.vmem (!%p5644_p4), [#allocation2], %s4869_s11 }
  0x7b   : > { %4563 = dma.done.wait (%p5645_p2), %s528_s23, 128  }
  0x7c   : > { %4565 = vsyncadd (%p5645_p2), %s528_s23, 4294967168  ;;  %s536_s19 = sand.u32 1, %s4719_s25   ;;  %s540_s27 = scalar_lea.vmem [#allocation5], %s4869_s11 }
  0x7d   : > { %s537_s26 = scalar_lea.sflag [#allocation6], %s536_s19 }
  0x7e   : > { %4567 = dma.done.wait (%p5645_p2), %s537_s26, 256  }
  0x7f   : > { %4569 = vsyncadd (%p5645_p2), %s537_s26, 4294967040  ;;  %v608_v0 = vld [vmem:[%s531_s15] sm:$0xff]  ;;  %v609_v1 = vld [vmem:[%s540_s27] sm:$0xff]  ;;  %s549_s24 = scalar_lea.vmem [#allocation7], %s4869_s11  ;;  %vm615_vm0 = vcmask 523264   ;;  %v4593_v16 = vmov 0.0|0.0  }
  0x80   : > { %v611_v2 = vld [vmem:[%s549_s24] sm:$0xff]  ;;  %v610_v3 = vadd.f32 %v609_v1, %v608_v0  ;;  %4213 = vmatprep.subr.bf16.mxu1 %v4593_v16  ;;  %4237 = vmatprep.subr.bf16.mxu0 %v4593_v16  ;;  %v646_v18 = vld [vmem:[%s5589_s5 + $0x10] sm:$0xff]  ;;  %v647_v19 = vld [vmem:[%s5589_s5 + $0x18] sm:$0xff]  ;;  %vm4594_vm1 = vmmov 0   ;;  %v4595_v23 = vmov 0.0   ;;  %s4596_s21 = smov 104  }
  0x81   : > { %v644_v11 = vld [vmem:[%s5589_s5] sm:$0xff]  ;;  %v645_v12 = vld [vmem:[%s5589_s5 + $0x8] sm:$0xff]  ;;  %v805_v20 = vld [vmem:[%s5591_s7 + $0x10] sm:$0xff]  ;;  %v4217_v21 = vpack.c.bf16 %v647_v19, %v646_v18  ;;  %4073 = vmatprep.mubr.msk.f32.mxu1 %vm4594_vm1, %v4595_v23  ;;  %4111 = vmatprep.mubr.msk.f32.mxu0 %vm4594_vm1, %v4595_v23  ;;  %s4597_s1 = smov 120   ;;  %s4598_s30 = smov 88   ;;  %vm1763_vm2 = vcmask 64512  }
  0x82   : > { %v4884_v4 = vadd.f32 %v611_v2, %v610_v3  ;;  %v4214_v13 = vpack.c.bf16 %v645_v12, %v644_v11  ;;  %v803_v14 = vld [vmem:[%s5591_s7] sm:$0xff]  ;;  %v804_v15 = vld [vmem:[%s5591_s7 + $0x8] sm:$0xff]  ;;  %v806_v22 = vld [vmem:[%s5591_s7 + $0x18] sm:$0xff]  ;;  %s4599_s29 = smov 112   ;;  %s4600_s13 = smov 72   ;;  %v908_v2 = vlaneseq  ;;  %vm3345_vm3 = vcmask 130048  }
  0x83   : > { %v4238_v17 = vpack.c.bf16 %v804_v15, %v803_v14  ;;  %v4241_v24 = vpack.c.bf16 %v806_v22, %v805_v20  ;;  %v648_v25 = vld [vmem:[%s5589_s5 + $0x20] sm:$0xff]  ;;  %v649_v26 = vld [vmem:[%s5589_s5 + $0x28] sm:$0xff]  ;;  %v650_v31 = vld [vmem:[%s5589_s5 + $0x30] sm:$0xff]  ;;  %s4601_s16 = smov 96   ;;  %s4602_s20 = smov 80   ;;  %vm3347_vm4 = vcmask 195584  }
  0x84   : > { %v616_v5 = vsel %vm615_vm0, %v4884_v4, 0.0  ;;  %4215 = vmatpush3.bf16.msra.mxu1 %v4214_v13  ;;  %v807_v27 = vld [vmem:[%s5591_s7 + $0x20] sm:$0xff]  ;;  %v808_v28 = vld [vmem:[%s5591_s7 + $0x28] sm:$0xff]  ;;  %v4220_v29 = vpack.c.bf16 %v649_v26, %v648_v25  ;;  %v651_v32 = vld [vmem:[%s5589_s5 + $0x38] sm:$0xff]  ;;  %v4603_v0 = vmov 1983009808  }
  0x85   : > { %617 = vadd.xlane.f32.xlu0 %v616_v5  ;;  %4239 = vmatpush3.bf16.msra.mxu0 %v4238_v17  ;;  %v4244_v30 = vpack.c.bf16 %v808_v28, %v807_v27  ;;  %v809_v33 = vld [vmem:[%s5591_s7 + $0x30] sm:$0xff]  ;;  %v810_v34 = vld [vmem:[%s5591_s7 + $0x38] sm:$0xff]  ;;  %v4223_v35 = vpack.c.bf16 %v651_v32, %v650_v31  ;;  %v3883_v41 = vld [vmem:[%s5587_s3] ss:$0 sm:$0xff]  ;;  %v906_v1 = vunpack.c.l.s4 %v4603_v0  ;;  %v4604_v3 = vmov 1934713408  }
  0x86   : > { %4216 = vmatprep.subr.bf16.mxu1 %v4593_v16  ;;  %4240 = vmatprep.subr.bf16.mxu0 %v4593_v16  ;;  %v4247_v36 = vpack.c.bf16 %v810_v34, %v809_v33  ;;  %v725_v43 = vld [vmem:[%s5590_s6] sm:$0xff]  ;;  %v726_v44 = vld [vmem:[%s5590_s6 + $0x8] sm:$0xff]  ;;  %v727_v49 = vld [vmem:[%s5590_s6 + $0x10] sm:$0xff]  ;;  %v970_v5 = vunpack.c.l.s4 %v4604_v3  ;;  %s4608_s10 = smov 40   ;;  %s4609_s23 = smov 32   ;;  %vm3349_vm5 = vcmask 261120  }
  0x87   : > { %v3884_v45 = vld [vmem:[%s5588_s4] ss:$0 sm:$0xff]  ;;  %v4226_v47 = vpack.c.bf16 %v726_v44, %v725_v43  ;;  %v728_v50 = vld [vmem:[%s5590_s6 + $0x18] sm:$0xff]  ;;  %v730_v53 = vld [vmem:[%s5590_s6 + $0x28] sm:$0xff]  ;;  %s4610_s15 = smov 56   ;;  %s4611_s19 = smov 48  }
  0x88   : > { %4218 = vmatpush3.bf16.msra.mxu1 %v4217_v21  ;;  %v4229_v51 = vpack.c.bf16 %v728_v50, %v727_v49  ;;  %v729_v52 = vld [vmem:[%s5590_s6 + $0x20] sm:$0xff]  ;;  %v731_v55 = vld [vmem:[%s5590_s6 + $0x30] sm:$0xff]  ;;  %v732_v56 = vld [vmem:[%s5590_s6 + $0x38] sm:$0xff]  ;;  %vm3351_vm6 = vcmask 326656   ;;  %vm3353_vm7 = vcmask 392192   ;;  %vm3355_vm8 = vcmask 457728  }
  0x89   : > { %4242 = vmatpush3.bf16.msra.mxu0 %v4241_v24  ;;  %4219 = vmatprep.subr.bf16.mxu1 %v4593_v16  ;;  %v4232_v54 = vpack.c.bf16 %v730_v53, %v729_v52  ;;  %v4235_v57 = vpack.c.bf16 %v732_v56, %v731_v55  ;;  %s5646_s24 = sld [smem:[#allocation21_spill]] }
  0x8a   : > { %4243 = vmatprep.subr.bf16.mxu0 %v4593_v16 }
  0x8c   : > { %4221 = vmatpush3.bf16.msra.mxu1 %v4220_v29 }
  0x8d   : > { %4245 = vmatpush3.bf16.msra.mxu0 %v4244_v30  ;;  %4222 = vmatprep.subr.bf16.mxu1 %v4593_v16 }
  0x8e   : > { %4246 = vmatprep.subr.bf16.mxu0 %v4593_v16 }
  0x90   : > { %4224 = vmatpush3.bf16.msra.mxu1 %v4223_v35 }
  0x91   : > { %4248 = vmatpush3.bf16.msra.mxu0 %v4247_v36  ;;  %4225 = vmatprep.subr.bf16.mxu1 %v4593_v16 }
  0x92   : > { %4134 = vmatprep.subr.mxu0 %v4595_v23 }
 0x112   : > { %v618_v6 = vpop.xlane.xlu0 %617 }
 0x113   : > { %v620_v7 = vmul.f32 0.015625, %v618_v6  ;;  %v907_v6 = vunpack.c.0.s8 %v906_v1 }
 0x115   : > { %v621_v8 = vsub.f32 %v4884_v4, %v620_v7  ;;  %v5020_v7 = vshrl.u32 %v908_v2, 7 }
 0x117   : > { %v622_v9 = vmul.f32 %v621_v8, %v621_v8  ;;  %v5023_v11 = vsub.s32 %v907_v6, %v5020_v7 }
 0x119   : > { %v623_v10 = vsel %vm615_vm0, %v622_v9, 0.0 }
 0x11a   : > { %624 = vadd.xlane.f32.xlu0 %v623_v10  ;;  %v971_v10 = vunpack.c.0.s8 %v970_v5 }
 0x11c   : > { %v5026_v18 = vsub.s32 %v971_v10, %v5020_v7 }
 0x1a7   : > { %v625_v37 = vpop.xlane.xlu0 %624 }
 0x1a8   : > { %v626_v38 = vmul.f32 0.015625, %v625_v37 }
 0x1aa   : > { %v627_v39 = vadd.f32 1e-05, %v626_v38 }
 0x1ac   : > { %4384 = vrsqrt.f32 %v627_v39 }
 0x1b6   : > { %v4385_v40 = vpop.eup %4384 }
 0x1b7   : > { %v629_v42 = vmul.f32 %v4385_v40, %v621_v8 }
 0x1b9   : > { %v636_v46 = vmul.f32 %v3883_v41, %v629_v42 }
 0x1bb   : > { %v643_v48 = vadd.f32 %v3884_v45, %v636_v46 }
 0x1bd   : > { %4074 = vmatmul.mubr.msk.f32.vlgmr.msra.gmra.mrb[0].mxu1 %vm615_vm0, %v643_v48  ;;  %4112 = vmatmul.mubr.msk.f32.vlgmr.msra.gmra.mrb[0].mxu0 %vm615_vm0, %v643_v48 }
 0x1be   : > { %4227 = vmatpush3.bf16.msra.mxu1 %v4226_v47  ;;  %4092 = vmatprep.mubr.msk.f32.mxu1 %vm4594_vm1, %v4595_v23 }
 0x1bf   : > { %4228 = vmatprep.subr.bf16.mxu1 %v4593_v16  ;;  %4136 = vmatprep.mubr.msk.f32.mxu0 %vm4594_vm1, %v4595_v23 }
 0x1c2   : > { %4230 = vmatpush3.bf16.msra.mxu1 %v4229_v51 }
 0x1c3   : > { %4231 = vmatprep.subr.bf16.mxu1 %v4593_v16 }
 0x1c6   : > { %4233 = vmatpush3.bf16.msra.mxu1 %v4232_v54 }
 0x1c7   : > { %4234 = vmatprep.subr.bf16.mxu1 %v4593_v16 }
 0x1ca   : > { %4236 = vmatpush3.bf16.msra.mxu1 %v4235_v57 }
 0x1cb   : > { %4114 = vmatprep.subr.mxu1 %v4595_v23 }
 0x1cd   : > { %4093 = vmatmul.mubr.msk.f32.vlgmr.msra.gmra.mrb[2].mxu1 %vm615_vm0, %v643_v48 }
 0x1ce   : > { %4116 = vmatprep.mubr.msk.f32.mxu1 %vm4594_vm1, %v4595_v23 }
 0x290   : > { %v4995_v58 = vpop.f32.mrb[0].mxu1  ;;  %v4997_v59 = vpop.f32.mrb[0].mxu0 }
 0x291   : > { %v4075_v60 = vpop.f32.mrb[1].mxu1  ;;  %v4113_v61 = vpop.f32.mrb[1].mxu0 }
 0x2a0   : > { %v799_v62 = vpop.f32.mrb[2].mxu1 }
 0x2a1   : > { %1182 = vrot.lane.b32.xlu0 %v799_v62, %s4596_s21  ;;  %1176 = vrot.lane.b32.xlu1 %v799_v62, %s4597_s1  ;;  %v4094_v63 = vpop.f32.mrb[3].mxu1 }
 0x2a5   : > { %894 = vrot.lane.b32.xlu0 %v4995_v58, %s4598_s30  ;;  %1179 = vrot.lane.b32.xlu1 %v799_v62, %s4599_s29 }
 0x2a9   : > { %1194 = vrot.lane.b32.xlu0 %v799_v62, %s4600_s13  ;;  %882 = vrot.lane.b32.xlu1 %v4995_v58, %s4597_s1 }
 0x2ad   : > { %900 = vrot.lane.b32.xlu0 %v4995_v58, %s4600_s13  ;;  %885 = vrot.lane.b32.xlu1 %v4995_v58, %s4599_s29 }
 0x2b1   : > { %888 = vrot.lane.b32.xlu1 %v4995_v58, %s4596_s21 }
 0x2b5   : > { %891 = vrot.lane.b32.xlu1 %v4995_v58, %s4601_s16 }
 0x2b9   : > { %1185 = vrot.lane.b32.xlu1 %v799_v62, %s4601_s16 }
 0x2bd   : > { %1188 = vrot.lane.b32.xlu1 %v799_v62, %s4598_s30 }
 0x2c1   : > { %1191 = vrot.lane.b32.xlu1 %v799_v62, %s4602_s20 }
 0x2c5   : > { %897 = vrot.lane.b32.xlu1 %v4995_v58, %s4602_s20 }
 0x313   : > { %v1183_v8 = vpop.permute.xlu0 %1182  ;;  %v1177_v9 = vpop.permute.xlu1 %1176 }
 0x314   : > { %v1213_v12 = vcombine.low %v1177_v9, %v1183_v8  ;;  %v1214_v13 = vcombine.high %v1177_v9, %v1183_v8 }
 0x316   : > { %v1221_v19 = vrot.slane %v1213_v12, %v5023_v11  ;;  %v1228_v20 = vrot.slane %v1214_v13, %v5023_v11 }
 0x317   : > { %v1180_v14 = vpop.permute.xlu1 %1179  ;;  %v5036_v38 = vpop.permute.xlu0 %894 }
 0x318   : > { %v1197_v15 = vcombine.low %v799_v62, %v1180_v14  ;;  %v1198_v17 = vcombine.high %v799_v62, %v1180_v14 }
 0x31a   : > { %v1205_v21 = vrot.slane %v1197_v15, %v5023_v11  ;;  %v1212_v22 = vrot.slane %v1198_v17, %v5023_v11 }
 0x31b   : > { %v883_v24 = vpop.permute.xlu1 %882  ;;  %v1195_v57 = vpop.permute.xlu0 %1194 }
 0x31c   : > { %v1261_v25 = vcombine.low %v1205_v21, %v1221_v19  ;;  %v1262_v26 = vcombine.high %v1205_v21, %v1221_v19  ;;  %v1277_v27 = vcombine.low %v1212_v22, %v1228_v20  ;;  %v1278_v28 = vcombine.high %v1212_v22, %v1228_v20 }
 0x31e   : > { %v1269_v29 = vrot.slane %v1261_v25, %v5026_v18  ;;  %v1276_v30 = vrot.slane %v1262_v26, %v5026_v18  ;;  %v1285_v31 = vrot.slane %v1277_v27, %v5026_v18  ;;  %v1292_v32 = vrot.slane %v1278_v28, %v5026_v18 }
 0x31f   : > { %v886_v33 = vpop.permute.xlu1 %885  ;;  %v901_v14 = vpop.permute.xlu0 %900 }
 0x320   : > { %v3896_v34 = vcombine.low %v1269_v29, %v1276_v30  ;;  %v3898_v35 = vcombine.high %v1269_v29, %v1276_v30  ;;  %v3900_v36 = vcombine.low %v1285_v31, %v1292_v32  ;;  %v3902_v37 = vcombine.high %v1285_v31, %v1292_v32 }
 0x321   : > { %v903_v43 = vcombine.low %v4995_v58, %v886_v33  ;;  %v904_v44 = vcombine.high %v4995_v58, %v886_v33  ;;  %v951_v22 = vcombine.low %v5036_v38, %v901_v14 }
 0x322   : > { %v1341_v39 = vrot.slane %v3896_v34, %v5023_v11  ;;  %v1357_v40 = vrot.slane %v3898_v35, %v5023_v11  ;;  %v1373_v41 = vrot.slane %v3900_v36, %v5023_v11  ;;  %v1389_v42 = vrot.slane %v3902_v37, %v5023_v11 }
 0x323   : > { %v889_v45 = vpop.permute.xlu1 %888  ;;  %v911_v52 = vrot.slane %v903_v43, %v5023_v11  ;;  %v918_v53 = vrot.slane %v904_v44, %v5023_v11 }
 0x324   : > { %v1397_v46 = vcombine.low %v1341_v39, %v1357_v40  ;;  %v1429_v47 = vcombine.low %v1373_v41, %v1389_v42  ;;  %v919_v48 = vcombine.low %v883_v24, %v889_v45  ;;  %v920_v49 = vcombine.high %v883_v24, %v889_v45 }
 0x325   : > { %v1398_v12 = vcombine.high %v1341_v39, %v1357_v40  ;;  %v1430_v13 = vcombine.high %v1373_v41, %v1389_v42  ;;  %v952_v24 = vcombine.high %v5036_v38, %v901_v14  ;;  %v959_v38 = vrot.slane %v951_v22, %v5023_v11 }
 0x326   : > { %v5045_v50 = vrot.slane %v1397_v46, %v5026_v18  ;;  %v5048_v51 = vrot.slane %v1429_v47, %v5026_v18  ;;  %v927_v54 = vrot.slane %v919_v48, %v5023_v11  ;;  %v934_v55 = vrot.slane %v920_v49, %v5023_v11 }
 0x327   : > { %v5054_v56 = vpop.permute.xlu1 %891  ;;  %v5071_v29 = vrot.slane %v1398_v12, %v5026_v18  ;;  %v5074_v30 = vrot.slane %v1430_v13, %v5026_v18  ;;  %v966_v45 = vrot.slane %v952_v24, %v5023_v11 }
 0x328   : > { %v1461_v58 = vcombine.low %v5045_v50, %v5048_v51  ;;  %v967_v60 = vcombine.low %v911_v52, %v927_v54  ;;  %v968_v61 = vcombine.high %v911_v52, %v927_v54  ;;  %v983_v62 = vcombine.low %v918_v53, %v934_v55 }
 0x329   : > { %v984_v63 = vcombine.high %v918_v53, %v934_v55  ;;  %v1462_v40 = vcombine.high %v5045_v50, %v5048_v51  ;;  %v1463_v47 = vcombine.low %v5071_v29, %v5074_v30 }
 0x32a   : > { %4115 = vmatpush3.xpose.msk.msra.mxu1 %vm1763_vm2, %v1461_v58  ;;  %v975_v0 = vrot.slane %v967_v60, %v5026_v18  ;;  %v982_v1 = vrot.slane %v968_v61, %v5026_v18  ;;  %v991_v2 = vrot.slane %v983_v62, %v5026_v18 }
 0x32b   : > { %v998_v3 = vrot.slane %v984_v63, %v5026_v18  ;;  %v1186_v5 = vpop.permute.xlu1 %1185  ;;  %4119 = vmatprep.subr.mxu1 %v4595_v23 }
 0x32c   : > { %v3888_v6 = vcombine.low %v975_v0, %v982_v1  ;;  %v3890_v8 = vcombine.high %v975_v0, %v982_v1  ;;  %v1464_v1 = vcombine.high %v5071_v29, %v5074_v30 }
 0x32d   : > { %v3892_v9 = vcombine.low %v991_v2, %v998_v3  ;;  %v3894_v10 = vcombine.high %v991_v2, %v998_v3 }
 0x32e   : > { %v1047_v15 = vrot.slane %v3888_v6, %v5023_v11  ;;  %v1063_v17 = vrot.slane %v3890_v8, %v5023_v11 }
 0x32f   : > { %v1079_v19 = vrot.slane %v3892_v9, %v5023_v11  ;;  %v1095_v20 = vrot.slane %v3894_v10, %v5023_v11  ;;  %v1189_v21 = vpop.permute.xlu1 %1188 }
 0x330   : > { %v1103_v25 = vcombine.low %v1047_v15, %v1063_v17  ;;  %v1245_v27 = vcombine.low %v1189_v21, %v1195_v57  ;;  %v1246_v28 = vcombine.high %v1189_v21, %v1195_v57  ;;  %v1104_v31 = vcombine.high %v1047_v15, %v1063_v17 }
 0x331   : > { %v1135_v26 = vcombine.low %v1079_v19, %v1095_v20  ;;  %v1136_v32 = vcombine.high %v1079_v19, %v1095_v20 }
 0x332   : > { %v1111_v34 = vrot.slane %v1103_v25, %v5026_v18  ;;  %v1253_v41 = vrot.slane %v1245_v27, %v5023_v11  ;;  %v1260_v42 = vrot.slane %v1246_v28, %v5023_v11  ;;  %v1118_v48 = vrot.slane %v1104_v31, %v5026_v18 }
 0x333   : > { %v1192_v33 = vpop.permute.xlu1 %1191  ;;  %v1143_v35 = vrot.slane %v1135_v26, %v5026_v18  ;;  %v1150_v49 = vrot.slane %v1136_v32, %v5026_v18 }
 0x334   : > { %v1229_v36 = vcombine.low %v1186_v5, %v1192_v33  ;;  %v1230_v37 = vcombine.high %v1186_v5, %v1192_v33 }
 0x335   : > { %v1167_v39 = vcombine.low %v1111_v34, %v1143_v35  ;;  %v1168_v57 = vcombine.high %v1111_v34, %v1143_v35  ;;  %v1170_v26 = vcombine.high %v1118_v48, %v1150_v49 }
 0x336   : > { %v1237_v43 = vrot.slane %v1229_v36, %v5023_v11  ;;  %v1244_v44 = vrot.slane %v1230_v37, %v5023_v11 }
 0x337   : > { %4117 = vmatmul.mubr.msk.f32.vlgmr.msra.gmra.mrb[4].mxu1 %vm1763_vm2, %v1167_v39  ;;  %v898_v46 = vpop.permute.xlu1 %897 }
 0x338   : > { %v1293_v50 = vcombine.low %v1237_v43, %v1253_v41  ;;  %v1294_v51 = vcombine.high %v1237_v43, %v1253_v41  ;;  %v1309_v52 = vcombine.low %v1244_v44, %v1260_v42  ;;  %v1310_v53 = vcombine.high %v1244_v44, %v1260_v42  ;;  %4120 = vmatpush3.xpose.msk.msra.mxu1 %vm1763_vm2, %v1462_v40 }
 0x339   : > { %v935_v54 = vcombine.low %v5054_v56, %v898_v46  ;;  %v936_v55 = vcombine.high %v5054_v56, %v898_v46  ;;  %4121 = vmatprep.mubr.msk.f32.mxu1 %vm4594_vm1, %v4595_v23  ;;  %4124 = vmatprep.subr.mxu1 %v4595_v23  ;;  %v1169_v56 = vcombine.low %v1118_v48, %v1150_v49 }
 0x33a   : > { %v1301_v58 = vrot.slane %v1293_v50, %v5026_v18  ;;  %v1308_v60 = vrot.slane %v1294_v51, %v5026_v18  ;;  %v1317_v61 = vrot.slane %v1309_v52, %v5026_v18  ;;  %v1324_v62 = vrot.slane %v1310_v53, %v5026_v18 }
 0x33b   : > { %v943_v63 = vrot.slane %v935_v54, %v5023_v11  ;;  %v950_v0 = vrot.slane %v936_v55, %v5023_v11  ;;  %4122 = vmatmul.mubr.msk.f32.vlgmr.msra.gmra.mrb[6].mxu1 %vm1763_vm2, %v1168_v57 }
 0x33c   : > { %v3897_v2 = vcombine.low %v1301_v58, %v1308_v60  ;;  %v3899_v3 = vcombine.high %v1301_v58, %v1308_v60  ;;  %v3901_v5 = vcombine.low %v1317_v61, %v1324_v62  ;;  %v3903_v6 = vcombine.high %v1317_v61, %v1324_v62  ;;  %4125 = vmatpush3.xpose.msk.msra.mxu1 %vm1763_vm2, %v1463_v47 }
 0x33d   : > { %v999_v8 = vcombine.low %v943_v63, %v959_v38  ;;  %v1000_v9 = vcombine.high %v943_v63, %v959_v38  ;;  %v1015_v10 = vcombine.low %v950_v0, %v966_v45  ;;  %v1016_v12 = vcombine.high %v950_v0, %v966_v45  ;;  %4126 = vmatprep.mubr.msk.f32.mxu1 %vm4594_vm1, %v4595_v23 }
 0x33e   : > { %v1348_v13 = vrot.slane %v3897_v2, %v5023_v11  ;;  %v1364_v14 = vrot.slane %v3899_v3, %v5023_v11  ;;  %v1380_v15 = vrot.slane %v3901_v5, %v5023_v11  ;;  %v1396_v17 = vrot.slane %v3903_v6, %v5023_v11  ;;  %4129 = vmatprep.subr.mxu1 %v4595_v23 }
 0x33f   : > { %v1007_v19 = vrot.slane %v999_v8, %v5026_v18  ;;  %v1014_v20 = vrot.slane %v1000_v9, %v5026_v18  ;;  %v1023_v21 = vrot.slane %v1015_v10, %v5026_v18  ;;  %v1030_v22 = vrot.slane %v1016_v12, %v5026_v18  ;;  %4127 = vmatmul.mubr.msk.f32.vlgmr.msra.gmra.mrb[8].mxu1 %vm1763_vm2, %v1169_v56 }
 0x340   : > { %v1413_v24 = vcombine.low %v1348_v13, %v1364_v14  ;;  %v1445_v25 = vcombine.low %v1380_v15, %v1396_v17  ;;  %4130 = vmatpush3.xpose.msk.msra.mxu1 %vm1763_vm2, %v1464_v1  ;;  %4131 = vmatprep.mubr.msk.f32.mxu1 %vm4594_vm1, %v4595_v23  ;;  %v1414_v31 = vcombine.high %v1348_v13, %v1364_v14 }
 0x341   : > { %v3889_v27 = vcombine.low %v1007_v19, %v1014_v20  ;;  %v3891_v28 = vcombine.high %v1007_v19, %v1014_v20  ;;  %v3893_v29 = vcombine.low %v1023_v21, %v1030_v22  ;;  %v3895_v30 = vcombine.high %v1023_v21, %v1030_v22  ;;  %4139 = vmatprep.subr.mxu1 %v4595_v23 }
 0x342   : > { %v1446_v32 = vcombine.high %v1380_v15, %v1396_v17  ;;  %v1421_v33 = vrot.slane %v1413_v24, %v5026_v18  ;;  %v1453_v34 = vrot.slane %v1445_v25, %v5026_v18  ;;  %v1428_v45 = vrot.slane %v1414_v31, %v5026_v18 }
 0x343   : > { %v1054_v35 = vrot.slane %v3889_v27, %v5023_v11  ;;  %v1070_v36 = vrot.slane %v3891_v28, %v5023_v11  ;;  %v1086_v37 = vrot.slane %v3893_v29, %v5023_v11  ;;  %v1102_v38 = vrot.slane %v3895_v30, %v5023_v11  ;;  %4132 = vmatmul.mubr.msk.f32.vlgmr.msra.gmra.mrb[10].mxu1 %vm1763_vm2, %v1170_v26 }
 0x344   : > { %v1465_v39 = vcombine.low %v1421_v33, %v1453_v34  ;;  %v1466_v40 = vcombine.high %v1421_v33, %v1453_v34  ;;  %4141 = vmatprep.mubr.msk.f32.mxu1 %vm4594_vm1, %v4595_v23  ;;  %v1460_v46 = vrot.slane %v1446_v32, %v5026_v18 }
 0x345   : > { %v1119_v41 = vcombine.low %v1054_v35, %v1070_v36  ;;  %v1120_v42 = vcombine.high %v1054_v35, %v1070_v36  ;;  %v1151_v43 = vcombine.low %v1086_v37, %v1102_v38  ;;  %v1152_v44 = vcombine.high %v1086_v37, %v1102_v38 }
 0x346   : > { %4135 = vmatpush3.xpose.msk.msra.mxu0 %vm1763_vm2, %v1465_v39  ;;  %4140 = vmatpush3.xpose.msk.msra.mxu1 %vm1763_vm2, %v1466_v40  ;;  %v1467_v53 = vcombine.low %v1428_v45, %v1460_v46  ;;  %v1468_v54 = vcombine.high %v1428_v45, %v1460_v46 }
 0x347   : > { %4144 = vmatprep.subr.mxu0 %v4595_v23  ;;  %4149 = vmatprep.subr.mxu1 %v4595_v23  ;;  %v1127_v47 = vrot.slane %v1119_v41, %v5026_v18  ;;  %v1159_v48 = vrot.slane %v1151_v43, %v5026_v18  ;;  %v1134_v51 = vrot.slane %v1120_v42, %v5026_v18 }
 0x348   : > { %v1166_v52 = vrot.slane %v1152_v44, %v5026_v18 }
 0x349   : > { %v1171_v49 = vcombine.low %v1127_v47, %v1159_v48  ;;  %v1172_v50 = vcombine.high %v1127_v47, %v1159_v48 }
 0x34a   : > { %v1173_v55 = vcombine.low %v1134_v51, %v1166_v52  ;;  %v1174_v57 = vcombine.high %v1134_v51, %v1166_v52 }
 0x34b   : > { %4137 = vmatmul.mubr.msk.f32.vlgmr.msra.gmra.mrb[2].mxu0 %vm1763_vm2, %v1171_v49  ;;  %4142 = vmatmul.mubr.msk.f32.vlgmr.msra.gmra.mrb[12].mxu1 %vm1763_vm2, %v1172_v50 }
 0x34c   : > { %4145 = vmatpush3.xpose.msk.msra.mxu0 %vm1763_vm2, %v1467_v53  ;;  %4150 = vmatpush3.xpose.msk.msra.mxu1 %vm1763_vm2, %v1468_v54 }
 0x34d   : > { %4146 = vmatprep.mubr.msk.f32.mxu0 %vm4594_vm1, %v4595_v23  ;;  %4151 = vmatprep.mubr.msk.f32.mxu1 %vm4594_vm1, %v4595_v23 }
 0x34e   : > { %4154 = vmatprep.subr.mxu0 %v4595_v23  ;;  %4159 = vmatprep.subr.mxu1 %v4595_v23 }
 0x34f   : > { %4147 = vmatmul.mubr.msk.f32.vlgmr.msra.gmra.mrb[4].mxu0 %vm1763_vm2, %v1173_v55  ;;  %4152 = vmatmul.mubr.msk.f32.vlgmr.msra.gmra.mrb[14].mxu1 %vm1763_vm2, %v1174_v57 }
 0x350   : > { %4156 = vmatprep.mubr.msk.f32.mxu0 %vm4594_vm1, %v4595_v23  ;;  %4161 = vmatprep.mubr.msk.f32.mxu1 %vm4594_vm1, %v4595_v23 }
 0x40a   : > { %v1836_v58 = vpop.f32.mrb[4].mxu1 }
 0x40b   : > { %v4118_v60 = vpop.f32.mrb[5].mxu1  ;;  %v2372_v61 = vsel %vm1763_vm2, %v1836_v58, -inf }
 0x40c   : > { %2373 = vmax.xlane.f32.xlu1 %v2372_v61 }
 0x40e   : > { %v1912_v62 = vpop.f32.mrb[6].mxu1 }
 0x40f   : > { %v4123_v63 = vpop.f32.mrb[7].mxu1  ;;  %v2375_v15 = vsel %vm1763_vm2, %v1912_v62, -inf }
 0x412   : > { %v1988_v0 = vpop.f32.mrb[8].mxu1 }
 0x413   : > { %v4128_v56 = vpop.f32.mrb[9].mxu1  ;;  %v2378_v19 = vsel %vm1763_vm2, %v1988_v0, -inf }
 0x416   : > { %v5159_v1 = vpop.f32.mrb[10].mxu1 }
 0x417   : > { %v4133_v2 = vpop.f32.mrb[11].mxu1  ;;  %v2381_v20 = vsel %vm1763_vm2, %v5159_v1, -inf }
 0x41d   : > { %1473 = vrot.lane.b32.xlu1 %v4997_v59, %s4599_s29  ;;  %s4606_s29 = smov 8  }
 0x41e   : > { %v2140_v3 = vpop.f32.mrb[2].mxu0  ;;  %v5163_v5 = vpop.f32.mrb[12].mxu1 }
 0x41f   : > { %v4138_v6 = vpop.f32.mrb[3].mxu0  ;;  %v4143_v8 = vpop.f32.mrb[13].mxu1  ;;  %v2384_v9 = vsel %vm1763_vm2, %v2140_v3, -inf  ;;  %v2387_v21 = vsel %vm1763_vm2, %v5163_v5, -inf }
 0x420   : > { %2385 = vmax.xlane.f32.xlu0 %v2384_v9 }
 0x421   : > { %1476 = vrot.lane.b32.xlu1 %v4997_v59, %s4596_s21 }
 0x422   : > { %v2292_v10 = vpop.f32.mrb[4].mxu0  ;;  %v5168_v12 = vpop.f32.mrb[14].mxu1 }
 0x423   : > { %v4148_v13 = vpop.f32.mrb[5].mxu0  ;;  %v4153_v14 = vpop.f32.mrb[15].mxu1  ;;  %v2390_v17 = vsel %vm1763_vm2, %v2292_v10, -inf  ;;  %v2393_v22 = vsel %vm1763_vm2, %v5168_v12, -inf }
 0x424   : > { %2376 = vmax.xlane.f32.xlu0 %v2375_v15 }
 0x428   : > { %2391 = vmax.xlane.f32.xlu0 %v2390_v17 }
 0x42c   : > { %2379 = vmax.xlane.f32.xlu0 %v2378_v19 }
 0x442   : > { %1470 = vrot.lane.b32.xlu0 %v4997_v59, %s4597_s1  ;;  %s5647_s1 = sld [smem:[#allocation22_spill]] }
 0x445   : > { %2382 = vmax.xlane.f32.xlu1 %v2381_v20 }
 0x449   : > { %2388 = vmax.xlane.f32.xlu1 %v2387_v21 }
 0x44d   : > { %2394 = vmax.xlane.f32.xlu1 %v2393_v22 }
 0x45e   : > { %1479 = vrot.lane.b32.xlu1 %v4997_v59, %s4601_s16  ;;  %s5649_s16 = sld [smem:[#allocation23_spill]] }
 0x499   : > { %v2374_v24 = vpop.xlane.xlu1 %2373 }
 0x49a   : > { %v2396_v25 = vsub.f32 %v1836_v58, %v2374_v24 }
 0x49c   : > { %v2404_v26 = vmul.f32 1.442695, %v2396_v25 }
 0x49d   : > { %v1474_v37 = vpop.permute.xlu1 %1473 }
 0x49e   : > { %4386 = vpow2.f32 %v2404_v26  ;;  %v1491_v42 = vcombine.low %v4997_v59, %v1474_v37  ;;  %v1492_v43 = vcombine.high %v4997_v59, %v1474_v37 }
 0x4a0   : > { %v1499_v51 = vrot.slane %v1491_v42, %v5023_v11  ;;  %v1506_v52 = vrot.slane %v1492_v43, %v5023_v11 }
 0x4a1   : > { %v1477_v45 = vpop.permute.xlu1 %1476 }
 0x4a8   : > { %v5183_v27 = vpop.eup %4386 }
 0x4a9   : > { %v2420_v28 = vsel %vm1763_vm2, %v5183_v27, 0.0 }
 0x4aa   : > { %2421 = vadd.xlane.f32.xlu0 %v2420_v28 }
 0x4ad   : > { %v2386_v29 = vpop.xlane.xlu0 %2385 }
 0x4ae   : > { %v2400_v30 = vsub.f32 %v2140_v3, %v2386_v29 }
 0x4b0   : > { %v2412_v31 = vmul.f32 1.442695, %v2400_v30 }
 0x4b1   : > { %v2377_v32 = vpop.xlane.xlu0 %2376 }
 0x4b2   : > { %4388 = vpow2.f32 %v2412_v31  ;;  %v2397_v33 = vsub.f32 %v1912_v62, %v2377_v32 }
 0x4b4   : > { %v2406_v34 = vmul.f32 1.442695, %v2397_v33 }
 0x4b5   : > { %v2392_v35 = vpop.xlane.xlu0 %2391 }
 0x4b6   : > { %4390 = vpow2.f32 %v2406_v34  ;;  %v2402_v36 = vsub.f32 %v2292_v10, %v2392_v35 }
 0x4b8   : > { %v2416_v38 = vmul.f32 1.442695, %v2402_v36 }
 0x4b9   : > { %v2380_v39 = vpop.xlane.xlu0 %2379 }
 0x4ba   : > { %4392 = vpow2.f32 %v2416_v38  ;;  %v2398_v40 = vsub.f32 %v1988_v0, %v2380_v39 }
 0x4bc   : > { %v5187_v41 = vpop.eup %4388  ;;  %v2408_v44 = vmul.f32 1.442695, %v2398_v40 }
 0x4bd   : > { %v1471_v46 = vpop.permute.xlu0 %1470  ;;  %v2432_v47 = vsel %vm1763_vm2, %v5187_v41, 0.0 }
 0x4be   : > { %4394 = vpow2.f32 %v2408_v44  ;;  %v1507_v48 = vcombine.low %v1471_v46, %v1477_v45  ;;  %v1508_v49 = vcombine.high %v1471_v46, %v1477_v45  ;;  %2433 = vadd.xlane.f32.xlu0 %v2432_v47 }
 0x4c0   : > { %v5193_v50 = vpop.eup %4390  ;;  %v1515_v53 = vrot.slane %v1507_v48, %v5023_v11  ;;  %v1522_v54 = vrot.slane %v1508_v49, %v5023_v11 }
 0x4c1   : > { %v2423_v55 = vsel %vm1763_vm2, %v5193_v50, 0.0 }
 0x4c2   : > { %v1555_v57 = vcombine.low %v1499_v51, %v1515_v53  ;;  %v1556_v58 = vcombine.high %v1499_v51, %v1515_v53  ;;  %v1571_v60 = vcombine.low %v1506_v52, %v1522_v54  ;;  %v1572_v61 = vcombine.high %v1506_v52, %v1522_v54  ;;  %2424 = vadd.xlane.f32.xlu1 %v2423_v55 }
 0x4c4   : > { %v5201_v62 = vpop.eup %4392  ;;  %v1563_v63 = vrot.slane %v1555_v57, %v5026_v18  ;;  %v1570_v0 = vrot.slane %v1556_v58, %v5026_v18  ;;  %v1579_v56 = vrot.slane %v1571_v60, %v5026_v18  ;;  %v1586_v2 = vrot.slane %v1572_v61, %v5026_v18 }
 0x4c5   : > { %v2438_v3 = vsel %vm1763_vm2, %v5201_v62, 0.0 }
 0x4c6   : > { %v3904_v6 = vcombine.low %v1563_v63, %v1570_v0  ;;  %v3906_v8 = vcombine.high %v1563_v63, %v1570_v0  ;;  %v3908_v9 = vcombine.low %v1579_v56, %v1586_v2  ;;  %v3910_v10 = vcombine.high %v1579_v56, %v1586_v2  ;;  %2439 = vadd.xlane.f32.xlu0 %v2438_v3 }
 0x4c8   : > { %v5209_v13 = vpop.eup %4394  ;;  %v1635_v14 = vrot.slane %v3904_v6, %v5023_v11  ;;  %v1651_v15 = vrot.slane %v3906_v8, %v5023_v11  ;;  %v1667_v17 = vrot.slane %v3908_v9, %v5023_v11  ;;  %v1683_v19 = vrot.slane %v3910_v10, %v5023_v11 }
 0x4c9   : > { %v2426_v20 = vsel %vm1763_vm2, %v5209_v13, 0.0 }
 0x4ca   : > { %2427 = vadd.xlane.f32.xlu0 %v2426_v20  ;;  %v1691_v21 = vcombine.low %v1635_v14, %v1651_v15  ;;  %v1723_v22 = vcombine.low %v1667_v17, %v1683_v19  ;;  %v1692_v24 = vcombine.high %v1635_v14, %v1651_v15  ;;  %v1724_v25 = vcombine.high %v1667_v17, %v1683_v19 }
 0x4cc   : > { %v1699_v26 = vrot.slane %v1691_v21, %v5026_v18  ;;  %v1731_v28 = vrot.slane %v1723_v22, %v5026_v18  ;;  %v1706_v29 = vrot.slane %v1692_v24, %v5026_v18  ;;  %v1738_v30 = vrot.slane %v1724_v25, %v5026_v18 }
 0x4ce   : > { %v1755_v31 = vcombine.low %v1699_v26, %v1731_v28  ;;  %v1756_v32 = vcombine.high %v1699_v26, %v1731_v28  ;;  %v1757_v33 = vcombine.low %v1706_v29, %v1738_v30  ;;  %v1758_v34 = vcombine.high %v1706_v29, %v1738_v30 }
 0x4d0   : > { %4155 = vmatpush3.msra.mxu0 %v1755_v31  ;;  %4160 = vmatpush3.msra.mxu1 %v1756_v32 }
 0x4d1   : > { %4164 = vmatprep.subr.mxu0 %v4595_v23  ;;  %4169 = vmatprep.subr.mxu1 %v4595_v23 }
 0x4d2   : > { %v2383_v35 = vpop.xlane.xlu1 %2382 }
 0x4d3   : > { %v2399_v36 = vsub.f32 %v5159_v1, %v2383_v35 }
 0x4d5   : > { %v2410_v37 = vmul.f32 1.442695, %v2399_v36 }
 0x4d6   : > { %v2389_v38 = vpop.xlane.xlu1 %2388 }
 0x4d7   : > { %4396 = vpow2.f32 %v2410_v37  ;;  %v2401_v39 = vsub.f32 %v5163_v5, %v2389_v38 }
 0x4d9   : > { %v2414_v40 = vmul.f32 1.442695, %v2401_v39 }
 0x4da   : > { %v2395_v42 = vpop.xlane.xlu1 %2394 }
 0x4db   : > { %4398 = vpow2.f32 %v2414_v40  ;;  %v2403_v43 = vsub.f32 %v5168_v12, %v2395_v42 }
 0x4dd   : > { %v2418_v44 = vmul.f32 1.442695, %v2403_v43 }
 0x4de   : > { %v1480_v52 = vpop.permute.xlu1 %1479 }
 0x4df   : > { %4400 = vpow2.f32 %v2418_v44 }
 0x4e1   : > { %v4397_v45 = vpop.eup %4396 }
 0x4e2   : > { %v2429_v46 = vsel %vm1763_vm2, %v4397_v45, 0.0 }
 0x4e3   : > { %2430 = vadd.xlane.f32.xlu1 %v2429_v46 }
 0x4e5   : > { %v5227_v47 = vpop.eup %4398 }
 0x4e6   : > { %v2435_v1 = vsel %vm1763_vm2, %v5227_v47, 0.0 }
 0x4e7   : > { %2436 = vadd.xlane.f32.xlu1 %v2435_v1 }
 0x4e9   : > { %v5231_v48 = vpop.eup %4400 }
 0x4ea   : > { %v2441_v5 = vsel %vm1763_vm2, %v5231_v48, 0.0 }
 0x4eb   : > { %2442 = vadd.xlane.f32.xlu0 %v2441_v5 }
 0x4f8   : > { %1485 = vrot.lane.b32.xlu1 %v4997_v59, %s4602_s20  ;;  %s5650_s20 = sld [smem:[#allocation17_spill]] }
 0x4fc   : > { %1488 = vrot.lane.b32.xlu1 %v4997_v59, %s4600_s13  ;;  %s4607_s13 = smov 24  }
 0x4fe   : > { %p5654_p5 = scmp.ne.s32.totalorder %s5650_s20, 0 }
 0x501   : > { %1482 = vrot.lane.b32.xlu0 %v4997_v59, %s4598_s30  ;;  %s4605_s30 = smov 16  }
 0x537   : > { %v2422_v12 = vpop.xlane.xlu0 %2421 }
 0x538   : > { %4402 = vrcp.f32 %v2422_v12 }
 0x542   : > { %v4403_v49 = vpop.eup %4402 }
 0x543   : > { %v2452_v51 = vmul.f32 %v4403_v49, %v5183_v27 }
 0x545   : > { %4157 = vmatmul.mubr.msk.f32.vlgmr.msra.gmra.mrb[6].mxu0 %vm1763_vm2, %v2452_v51 }
 0x546   : > { %4165 = vmatpush3.msra.mxu0 %v1757_v33  ;;  %4166 = vmatprep.mubr.msk.f32.mxu0 %vm4594_vm1, %v4595_v23 }
 0x547   : > { %4174 = vmatprep.subr.mxu0 %v4595_v23 }
 0x54b   : > { %v2434_v53 = vpop.xlane.xlu0 %2433 }
 0x54f   : > { %v2425_v54 = vpop.xlane.xlu1 %2424 }
 0x550   : > { %4404 = vrcp.f32 %v2425_v54 }
 0x553   : > { %v2440_v55 = vpop.xlane.xlu0 %2439 }
 0x557   : > { %v2428_v57 = vpop.xlane.xlu0 %2427 }
 0x558   : > { %4406 = vrcp.f32 %v2428_v57 }
 0x55a   : > { %v4405_v59 = vpop.eup %4404 }
 0x55b   : > { %v2453_v58 = vmul.f32 %v4405_v59, %v5193_v50 }
 0x55d   : > { %4162 = vmatmul.mubr.msk.f32.vlgmr.msra.gmra.mrb[16].mxu1 %vm1763_vm2, %v2453_v58 }
 0x55e   : > { %4170 = vmatpush3.msra.mxu1 %v1758_v34  ;;  %4171 = vmatprep.mubr.msk.f32.mxu1 %vm4594_vm1, %v4595_v23 }
 0x55f   : > { %4179 = vmatprep.subr.mxu1 %v4595_v23 }
 0x562   : > { %v4407_v27 = vpop.eup %4406 }
 0x563   : > { %v2454_v60 = vmul.f32 %v4407_v27, %v5209_v13 }
 0x565   : > { %4167 = vmatmul.mubr.msk.f32.vlgmr.msra.gmra.mrb[8].mxu0 %vm1763_vm2, %v2454_v60 }
 0x566   : > { %4176 = vmatprep.mubr.msk.f32.mxu0 %vm4594_vm1, %v4595_v23 }
 0x570   : > { %v2431_v61 = vpop.xlane.xlu1 %2430 }
 0x571   : > { %4408 = vrcp.f32 %v2431_v61 }
 0x572   : > { %4410 = vrcp.f32 %v2434_v53 }
 0x574   : > { %v2437_v63 = vpop.xlane.xlu1 %2436 }
 0x575   : > { %4412 = vrcp.f32 %v2437_v63 }
 0x576   : > { %4414 = vrcp.f32 %v2440_v55 }
 0x578   : > { %v2443_v50 = vpop.xlane.xlu0 %2442  ;;  %v1486_v0 = vpop.permute.xlu1 %1485 }
 0x579   : > { %v1523_v2 = vcombine.low %v1480_v52, %v1486_v0  ;;  %v1524_v3 = vcombine.high %v1480_v52, %v1486_v0  ;;  %4416 = vrcp.f32 %v2443_v50 }
 0x57b   : > { %v4409_v56 = vpop.eup %4408  ;;  %v1531_v13 = vrot.slane %v1523_v2, %v5023_v11  ;;  %v1538_v15 = vrot.slane %v1524_v3, %v5023_v11 }
 0x57c   : > { %v2455_v6 = vmul.f32 %v4409_v56, %v4397_v45  ;;  %v1483_v8 = vpop.permute.xlu0 %1482  ;;  %v1489_v9 = vpop.permute.xlu1 %1488 }
 0x57d   : > { %v1539_v10 = vcombine.low %v1483_v8, %v1489_v9  ;;  %v1540_v14 = vcombine.high %v1483_v8, %v1489_v9  ;;  %v4411_v38 = vpop.eup %4410 }
 0x57e   : > { %4172 = vmatmul.mubr.msk.f32.vlgmr.msra.gmra.mrb[18].mxu1 %vm1763_vm2, %v2455_v6  ;;  %v2456_v53 = vmul.f32 %v4411_v38, %v5187_v41 }
 0x57f   : > { %v1547_v17 = vrot.slane %v1539_v10, %v5023_v11  ;;  %v1554_v19 = vrot.slane %v1540_v14, %v5023_v11  ;;  %4181 = vmatprep.mubr.msk.f32.mxu1 %vm4594_vm1, %v4595_v23  ;;  %v4413_v44 = vpop.eup %4412 }
 0x580   : > { %v4415_v1 = vpop.eup %4414  ;;  %v2457_v54 = vmul.f32 %v4413_v44, %v5227_v47 }
 0x581   : > { %v1587_v20 = vcombine.low %v1531_v13, %v1547_v17  ;;  %v1588_v21 = vcombine.high %v1531_v13, %v1547_v17  ;;  %v1603_v22 = vcombine.low %v1538_v15, %v1554_v19  ;;  %v1604_v24 = vcombine.high %v1538_v15, %v1554_v19 }
 0x582   : > { %v2458_v59 = vmul.f32 %v4415_v1, %v5201_v62  ;;  %v3362_v1 = vld [vmem:[%s5592_s8 + $0x28] sm:$0xff] }
 0x583   : > { %v1595_v25 = vrot.slane %v1587_v20, %v5026_v18  ;;  %v1602_v26 = vrot.slane %v1588_v21, %v5026_v18  ;;  %v1611_v28 = vrot.slane %v1603_v22, %v5026_v18  ;;  %v1618_v29 = vrot.slane %v1604_v24, %v5026_v18  ;;  %v4417_v52 = vpop.eup %4416 }
 0x584   : > { %v2459_v58 = vmul.f32 %v4417_v52, %v5231_v48 }
 0x585   : > { %v3905_v30 = vcombine.low %v1595_v25, %v1602_v26  ;;  %v3907_v31 = vcombine.high %v1595_v25, %v1602_v26  ;;  %v3909_v32 = vcombine.low %v1611_v28, %v1618_v29  ;;  %v3911_v33 = vcombine.high %v1611_v28, %v1618_v29  ;;  %v3357_v26 = vld [vmem:[%s5592_s8] sm:$0xff]  ;;  %v3358_v28 = vld [vmem:[%s5592_s8 + $0x8] sm:$0xff] }
 0x587   : > { %v1642_v34 = vrot.slane %v3905_v30, %v5023_v11  ;;  %v1658_v35 = vrot.slane %v3907_v31, %v5023_v11  ;;  %v1674_v36 = vrot.slane %v3909_v32, %v5023_v11  ;;  %v1690_v37 = vrot.slane %v3911_v33, %v5023_v11  ;;  %v3359_v33 = vld [vmem:[%s5592_s8 + $0x10] sm:$0xff] }
 0x589   : > { %v1707_v39 = vcombine.low %v1642_v34, %v1658_v35  ;;  %v1739_v40 = vcombine.low %v1674_v36, %v1690_v37  ;;  %v1708_v42 = vcombine.high %v1642_v34, %v1658_v35  ;;  %v1740_v43 = vcombine.high %v1674_v36, %v1690_v37  ;;  %v3360_v34 = vld [vmem:[%s5592_s8 + $0x18] sm:$0xff] }
 0x58a   : > { %v4250_v35 = vpack.c.bf16 %v3358_v28, %v3357_v26 }
 0x58b   : > { %v1715_v45 = vrot.slane %v1707_v39, %v5026_v18  ;;  %v1747_v46 = vrot.slane %v1739_v40, %v5026_v18  ;;  %v1722_v5 = vrot.slane %v1708_v42, %v5026_v18  ;;  %v1754_v12 = vrot.slane %v1740_v43, %v5026_v18 }
 0x58c   : > { %v4253_v40 = vpack.c.bf16 %v3360_v34, %v3359_v33 }
 0x58d   : > { %v1759_v49 = vcombine.low %v1715_v45, %v1747_v46  ;;  %v1760_v51 = vcombine.high %v1715_v45, %v1747_v46  ;;  %v1761_v55 = vcombine.low %v1722_v5, %v1754_v12  ;;  %v1762_v57 = vcombine.high %v1722_v5, %v1754_v12  ;;  %v3361_v46 = vld [vmem:[%s5592_s8 + $0x20] sm:$0xff] }
 0x58f   : > { %4175 = vmatpush3.msra.mxu0 %v1759_v49  ;;  %4180 = vmatpush3.msra.mxu1 %v1760_v51 }
 0x590   : > { %4177 = vmatmul.mubr.msk.f32.vlgmr.msra.gmra.mrb[10].mxu0 %vm1763_vm2, %v2456_v53  ;;  %4182 = vmatmul.mubr.msk.f32.vlgmr.msra.gmra.mrb[20].mxu1 %vm1763_vm2, %v2457_v54  ;;  %v4256_v54 = vpack.c.bf16 %v3362_v1, %v3361_v46 }
 0x591   : > { %4184 = vmatprep.subr.mxu0 %v4595_v23  ;;  %4189 = vmatprep.subr.mxu1 %v4595_v23 }
 0x592   : > { %4185 = vmatpush3.msra.mxu0 %v1761_v55  ;;  %4190 = vmatpush3.msra.mxu1 %v1762_v57 }
 0x593   : > { %4186 = vmatprep.mubr.msk.f32.mxu0 %vm4594_vm1, %v4595_v23  ;;  %4191 = vmatprep.mubr.msk.f32.mxu1 %vm4594_vm1, %v4595_v23 }
 0x594   : > { %4187 = vmatmul.mubr.msk.f32.vlgmr.msra.gmra.mrb[12].mxu0 %vm1763_vm2, %v2458_v59  ;;  %4192 = vmatmul.mubr.msk.f32.vlgmr.msra.gmra.mrb[22].mxu1 %vm1763_vm2, %v2459_v58 }
 0x595   : > { %4249 = vmatprep.subr.bf16.mxu0 %v4593_v16  ;;  %4210 = vmatprep.mubr.msk.f32.mxu0 %vm4594_vm1, %v4595_v23 }
 0x596   : > { %3570 = vmatprep.mubr.f32.mxu1 %v4595_v23  ;;  %4251 = vmatpush3.bf16.msra.mxu0 %v4250_v35 }
 0x597   : > { %4252 = vmatprep.subr.bf16.mxu0 %v4593_v16 }
 0x59a   : > { %4254 = vmatpush3.bf16.msra.mxu0 %v4253_v40 }
 0x59b   : > { %4255 = vmatprep.subr.bf16.mxu0 %v4593_v16 }
 0x59e   : > { %4257 = vmatpush3.bf16.msra.mxu0 %v4256_v54 }
 0x59f   : > { %4258 = vmatprep.subr.bf16.mxu0 %v4593_v16  ;;  %v3364_v16 = vld [vmem:[%s5592_s8 + $0x38] sm:$0xff] }
 0x618   : > { %v2529_v41 = vpop.f32.mrb[6].mxu0 }
 0x619   : > { %v4158_v62 = vpop.f32.mrb[7].mxu0 }
 0x630   : > { %v2602_v47 = vpop.f32.mrb[16].mxu1 }
 0x631   : > { %v4163_v48 = vpop.f32.mrb[17].mxu1 }
 0x638   : > { %v2675_v27 = vpop.f32.mrb[8].mxu0 }
 0x639   : > { %v3044_v60 = vcombine.low %v2529_v41, %v2675_v27  ;;  %v3045_v61 = vcombine.high %v2529_v41, %v2675_v27  ;;  %v4168_v63 = vpop.f32.mrb[9].mxu0 }
 0x63b   : > { %v3052_v3 = vrot.slane %v3044_v60, %v5023_v11  ;;  %v3059_v6 = vrot.slane %v3045_v61, %v5023_v11 }
 0x651   : > { %v2748_v50 = vpop.f32.mrb[18].mxu1 }
 0x652   : > { %v3060_v0 = vcombine.low %v2602_v47, %v2748_v50  ;;  %v3061_v56 = vcombine.high %v2602_v47, %v2748_v50  ;;  %v4173_v2 = vpop.f32.mrb[19].mxu1 }
 0x654   : > { %v3068_v8 = vrot.slane %v3060_v0, %v5023_v11  ;;  %v3075_v23 = vrot.slane %v3061_v56, %v5023_v11 }
 0x656   : > { %v3108_v9 = vcombine.low %v3052_v3, %v3068_v8  ;;  %v3109_v10 = vcombine.high %v3052_v3, %v3068_v8  ;;  %v3124_v14 = vcombine.low %v3059_v6, %v3075_v23  ;;  %v3125_v13 = vcombine.high %v3059_v6, %v3075_v23  ;;  %v3363_v8 = vld [vmem:[%s5592_s8 + $0x30] sm:$0xff] }
 0x658   : > { %v3116_v15 = vrot.slane %v3108_v9, %v5026_v18  ;;  %v3123_v17 = vrot.slane %v3109_v10, %v5026_v18  ;;  %v3132_v19 = vrot.slane %v3124_v14, %v5026_v18  ;;  %v3139_v20 = vrot.slane %v3125_v13, %v5026_v18 }
 0x659   : > { %v4259_v13 = vpack.c.bf16 %v3364_v16, %v3363_v8  ;;  %v3484_v16 = vld [vmem:[%s5596_s12 + $0x48] sm:$0xff] }
 0x65a   : > { %v3936_v21 = vcombine.low %v3116_v15, %v3123_v17  ;;  %v3938_v22 = vcombine.high %v3116_v15, %v3123_v17  ;;  %v3940_v24 = vcombine.low %v3132_v19, %v3139_v20  ;;  %v3942_v25 = vcombine.high %v3132_v19, %v3139_v20 }
 0x65b   : > { %4260 = vmatpush3.bf16.msra.mxu0 %v4259_v13 }
 0x65c   : > { %v3188_v29 = vrot.slane %v3936_v21, %v5023_v11  ;;  %v3204_v30 = vrot.slane %v3938_v22, %v5023_v11  ;;  %v3220_v31 = vrot.slane %v3940_v24, %v5023_v11  ;;  %v3236_v32 = vrot.slane %v3942_v25, %v5023_v11 }
 0x65e   : > { %v3245_v36 = vcombine.high %v3188_v29, %v3204_v30  ;;  %v3277_v37 = vcombine.high %v3220_v31, %v3236_v32  ;;  %v3244_v38 = vcombine.low %v3188_v29, %v3204_v30  ;;  %v3276_v39 = vcombine.low %v3220_v31, %v3236_v32 }
 0x660   : > { %v3259_v42 = vrot.slane %v3245_v36, %v5026_v18  ;;  %v3291_v43 = vrot.slane %v3277_v37, %v5026_v18  ;;  %v5319_v44 = vrot.slane %v3244_v38, %v5026_v18  ;;  %v5322_v45 = vrot.slane %v3276_v39, %v5026_v18 }
 0x662   : > { %v3310_v5 = vcombine.low %v3259_v42, %v3291_v43  ;;  %v3309_v12 = vcombine.high %v5319_v44, %v5322_v45  ;;  %v3311_v49 = vcombine.high %v3259_v42, %v3291_v43  ;;  %v3308_v51 = vcombine.low %v5319_v44, %v5322_v45  ;;  %v3944_v44 = vld [vmem:[%s5593_s9] ss:$0 sm:$0xff] }
 0x663   : > { %v2821_v52 = vpop.f32.mrb[10].mxu0  ;;  %v2894_v53 = vpop.f32.mrb[20].mxu1 }
 0x664   : > { %v4178_v55 = vpop.f32.mrb[11].mxu0  ;;  %3321 = vrot.lane.b32.xlu1 %v3310_v5, %s4605_s30  ;;  %3317 = vrot.lane.b32.xlu0 %v3309_v12, %s4606_s29  ;;  %v4183_v57 = vpop.f32.mrb[21].mxu1 }
 0x667   : > { %v2967_v59 = vpop.f32.mrb[12].mxu0  ;;  %v3040_v58 = vpop.f32.mrb[22].mxu1 }
 0x668   : > { %v3076_v41 = vcombine.low %v2821_v52, %v2967_v59  ;;  %v3077_v62 = vcombine.high %v2821_v52, %v2967_v59  ;;  %v3092_v47 = vcombine.low %v2894_v53, %v3040_v58  ;;  %v3093_v48 = vcombine.high %v2894_v53, %v3040_v58  ;;  %v4188_v27 = vpop.f32.mrb[13].mxu0  ;;  %3325 = vrot.lane.b32.xlu0 %v3311_v49, %s4607_s13  ;;  %v4193_v60 = vpop.f32.mrb[23].mxu1  ;;  %s5648_s13 = sld [smem:[#allocation24_spill]] }
 0x669   : > { %v3476_v27 = vld [vmem:[%s5596_s12 + $0x8] sm:$0xff] }
 0x66a   : > { %v3084_v61 = vrot.slane %v3076_v41, %v5023_v11  ;;  %v3091_v63 = vrot.slane %v3077_v62, %v5023_v11  ;;  %v3100_v50 = vrot.slane %v3092_v47, %v5023_v11  ;;  %v3107_v0 = vrot.slane %v3093_v48, %v5023_v11 }
 0x66c   : > { %v3140_v56 = vcombine.low %v3084_v61, %v3100_v50  ;;  %v3141_v2 = vcombine.high %v3084_v61, %v3100_v50  ;;  %v3156_v3 = vcombine.low %v3091_v63, %v3107_v0  ;;  %v3157_v6 = vcombine.high %v3091_v63, %v3107_v0  ;;  %v3475_v61 = vld [vmem:[%s5596_s12] sm:$0xff]  ;;  %v3477_v63 = vld [vmem:[%s5596_s12 + $0x10] sm:$0xff]  ;;  %v3480_v0 = vld [vmem:[%s5596_s12 + $0x28] sm:$0xff] }
 0x66d   : > { %v4263_v50 = vpack.c.bf16 %v3477_v63, %v3475_v61 }
 0x66e   : > { %v3148_v23 = vrot.slane %v3140_v56, %v5026_v18  ;;  %v3155_v9 = vrot.slane %v3141_v2, %v5026_v18  ;;  %v3164_v10 = vrot.slane %v3156_v3, %v5026_v18  ;;  %v3171_v14 = vrot.slane %v3157_v6, %v5026_v18  ;;  %v3482_v56 = vld [vmem:[%s5596_s12 + $0x38] sm:$0xff]  ;;  %v3479_v3 = vld [vmem:[%s5596_s12 + $0x20] sm:$0xff]  ;;  %v3481_v6 = vld [vmem:[%s5596_s12 + $0x30] sm:$0xff] }
 0x66f   : > { %v4265_v2 = vpack.c.bf16 %v3482_v56, %v3480_v0  ;;  %v4267_v8 = vpack.c.bf16 %v3481_v6, %v3479_v3  ;;  %v3641_v63 = vld [vmem:[%s5648_s13 + $0x50] sm:$0xff]  ;;  %v3659_v56 = vld [vmem:[%s5648_s13 + $0xe0] sm:$0xff] }
 0x670   : > { %v3937_v15 = vcombine.low %v3148_v23, %v3155_v9  ;;  %v3939_v17 = vcombine.high %v3148_v23, %v3155_v9  ;;  %v3941_v19 = vcombine.low %v3164_v10, %v3171_v14  ;;  %v3943_v20 = vcombine.high %v3164_v10, %v3171_v14  ;;  %v3486_v23 = vld [vmem:[%s5596_s12 + $0x58] sm:$0xff]  ;;  %v3483_v10 = vld [vmem:[%s5596_s12 + $0x40] sm:$0xff]  ;;  %v3485_v14 = vld [vmem:[%s5596_s12 + $0x50] sm:$0xff] }
 0x671   : > { %v4269_v9 = vpack.c.bf16 %v3486_v23, %v3484_v16  ;;  %v4271_v13 = vpack.c.bf16 %v3485_v14, %v3483_v10  ;;  %v3643_v6 = vld [vmem:[%s5648_s13 + $0x60] sm:$0xff]  ;;  %v3661_v23 = vld [vmem:[%s5648_s13 + $0xf0] sm:$0xff] }
 0x672   : > { %v3195_v21 = vrot.slane %v3937_v15, %v5023_v11  ;;  %v3211_v22 = vrot.slane %v3939_v17, %v5023_v11  ;;  %v3227_v24 = vrot.slane %v3941_v19, %v5023_v11  ;;  %v3243_v25 = vrot.slane %v3943_v20, %v5023_v11  ;;  %v3488_v15 = vld [vmem:[%s5596_s12 + $0x68] sm:$0xff]  ;;  %v3490_v17 = vld [vmem:[%s5596_s12 + $0x78] sm:$0xff]  ;;  %v3487_v20 = vld [vmem:[%s5596_s12 + $0x60] sm:$0xff] }
 0x673   : > { %v4273_v19 = vpack.c.bf16 %v3490_v17, %v3488_v15  ;;  %v3645_v14 = vld [vmem:[%s5648_s13 + $0x70] sm:$0xff]  ;;  %v3495_v17 = vsub.s32 0, %v5020_v7 }
 0x674   : > { %v3260_v26 = vcombine.low %v3195_v21, %v3211_v22  ;;  %v3292_v28 = vcombine.low %v3227_v24, %v3243_v25  ;;  %v3261_v29 = vcombine.high %v3195_v21, %v3211_v22  ;;  %v3293_v30 = vcombine.high %v3227_v24, %v3243_v25  ;;  %v3489_v21 = vld [vmem:[%s5596_s12 + $0x70] sm:$0xff] }
 0x675   : > { %v4275_v22 = vpack.c.bf16 %v3489_v21, %v3487_v20  ;;  %v3499_v20 = vsub.s32 1, %v5020_v7 }
 0x676   : > { %v3268_v31 = vrot.slane %v3260_v26, %v5026_v18  ;;  %v3300_v32 = vrot.slane %v3292_v28, %v5026_v18  ;;  %v3275_v33 = vrot.slane %v3261_v29, %v5026_v18  ;;  %v3307_v34 = vrot.slane %v3293_v30, %v5026_v18  ;;  %v3946_v29 = vld [vmem:[%s5646_s24] ss:$0 sm:$0xff]  ;;  %s5652_s24 = sld [smem:[#allocation26_spill]] }
 0x678   : > { %v3313_v35 = vcombine.high %v3268_v31, %v3300_v32  ;;  %v3312_v36 = vcombine.low %v3268_v31, %v3300_v32  ;;  %v3315_v37 = vcombine.high %v3275_v33, %v3307_v34  ;;  %v3314_v38 = vcombine.low %v3275_v33, %v3307_v34  ;;  %v3947_v31 = vld [vmem:[%s5647_s1] ss:$0 sm:$0xff]  ;;  %s3743_s1 = scalar_lea.sflag [#allocation4], %s4866_s17 }
 0x679   : > { %v3647_v34 = vld [vmem:[%s5648_s13 + $0x80] sm:$0xff] }
 0x67a   : > { %3333 = vrot.lane.b32.xlu0 %v3313_v35, %s4608_s10  ;;  %3329 = vrot.lane.b32.xlu1 %v3312_v36, %s4609_s23  ;;  %v3648_v35 = vld [vmem:[%s5648_s13 + $0x88] sm:$0xff]  ;;  %s5651_s10 = sld [smem:[#allocation25_spill]]  ;;  %s3951_s23 = sshll.u32 %s4719_s25, 7 }
 0x67b   : > { %v4277_v36 = vpack.c.bf16 %v3648_v35, %v3647_v34  ;;  %s4612_s25 = smov [#allocation8]  }
 0x67c   : > { %s5653_s0 = smov %s5652_s24  ;;  %s5539_s21 = scalar_lea.hbm %s5652_s24, %s3951_s23 }
 0x67d   : > { %4278 = vmatprep.subr.bf16.mxu0 %v4277_v36 }
 0x67e   : > { %3341 = vrot.lane.b32.xlu0 %v3315_v37, %s4610_s15  ;;  %3337 = vrot.lane.b32.xlu1 %v3314_v38, %s4611_s19  ;;  %v3631_v37 = vld [vmem:[%s5648_s13] sm:$0xff]  ;;  %v3632_v38 = vld [vmem:[%s5648_s13 + $0x8] sm:$0xff]  ;;  %s607_s15 = scalar_lea.vmem [#allocation8], %s4869_s11  ;;  %s4522_s11 = sshll.u32 %s4612_s25, 4  ;;  %s4523_s11 = int_to_ptr.vmem [resolvable:$false] %s4522_s11 }
 0x67f   : > { %s3756_s19 = sshll.u32 %s607_s15, 4  ;;  %s4524_s29 = scalar_lea.vmem %s4523_s11, 256  ;;  %s5541_s19 = int_to_ptr.vmem [resolvable:$true] %s3756_s19 }
 0x680   : > { %s4518_s30 = scalar_lea.vmem %s5541_s19, 128  ;;  %p4525_p6 = scmp.lt.s32.totalorder %s5541_s19, %s4523_s11 }
 0x681   : > { %p4519_p10 = scmp.ne.s32.totalorder %s5541_s19, %s4518_s30  ;;  %p4526_p12 = scmp.lt.s32.totalorder %s4524_s29, %s4518_s30 }
 0x683   : > { %p4520_p7 = pnand %p4519_p10, %p5654_p5  ;;  %p4527_p0 = por %p4526_p12, %p4525_p6 }
 0x685   : > { %p4521_p9 = pneg %p4520_p7 }
 0x687   : > { %p4528_p8 = pnand %p4527_p0, %p4521_p9 }
 0x6d6   : > { %v3318_v11 = vpop.permute.xlu0 %3317  ;;  %v3322_v39 = vpop.permute.xlu1 %3321 }
 0x6d7   : > { %v3344_v40 = vsel %vm1763_vm2, %v3308_v51, %v3318_v11  ;;  %v4279_v11 = vpack.c.bf16 %v3632_v38, %v3631_v37 }
 0x6d8   : > { %v3346_v42 = vsel %vm3345_vm3, %v3344_v40, %v3322_v39  ;;  %v3649_v39 = vld [vmem:[%s5648_s13 + $0x90] sm:$0xff]  ;;  %v3650_v40 = vld [vmem:[%s5648_s13 + $0x98] sm:$0xff] }
 0x6da   : > { %v3326_v18 = vpop.permute.xlu0 %3325 }
 0x6db   : > { %v3348_v43 = vsel %vm3347_vm4, %v3346_v42, %v3326_v18  ;;  %v4281_v18 = vpack.c.bf16 %v3650_v40, %v3649_v39  ;;  %v3633_v42 = vld [vmem:[%s5648_s13 + $0x10] sm:$0xff] }
 0x6ec   : > { %v3334_v46 = vpop.permute.xlu0 %3333  ;;  %v3330_v1 = vpop.permute.xlu1 %3329 }
 0x6ed   : > { %v3350_v5 = vsel %vm3349_vm5, %v3348_v43, %v3330_v1  ;;  %v3634_v43 = vld [vmem:[%s5648_s13 + $0x18] sm:$0xff]  ;;  %v3651_v1 = vld [vmem:[%s5648_s13 + $0xa0] sm:$0xff] }
 0x6ee   : > { %v3352_v49 = vsel %vm3351_vm6, %v3350_v5, %v3334_v46  ;;  %v4283_v46 = vpack.c.bf16 %v3634_v43, %v3633_v42  ;;  %v3652_v5 = vld [vmem:[%s5648_s13 + $0xa8] sm:$0xff] }
 0x6f0   : > { %v3342_v12 = vpop.permute.xlu0 %3341  ;;  %v3338_v52 = vpop.permute.xlu1 %3337 }
 0x6f1   : > { %v3354_v53 = vsel %vm3353_vm7, %v3352_v49, %v3338_v52  ;;  %v3635_v49 = vld [vmem:[%s5648_s13 + $0x20] sm:$0xff]  ;;  %v3636_v52 = vld [vmem:[%s5648_s13 + $0x28] sm:$0xff] }
 0x6f2   : > { %v3356_v54 = vsel %vm3355_vm8, %v3354_v53, %v3342_v12  ;;  %v4285_v12 = vpack.c.bf16 %v3652_v5, %v3651_v1  ;;  %v4287_v53 = vpack.c.bf16 %v3636_v52, %v3635_v49 }
 0x6f3   : > { %4211 = vmatmul.mubr.msk.f32.vlgmr.msra.gmra.mrb[14].mxu0 %vm615_vm0, %v3356_v54  ;;  %v3653_v54 = vld [vmem:[%s5648_s13 + $0xb0] sm:$0xff] }
 0x6f4   : > { %4280 = vmatpush3.bf16.msra.mxu0 %v4279_v11 }
 0x6f5   : > { %4282 = vmatprep.subr.bf16.mxu0 %v4281_v18 }
 0x6f8   : > { %4284 = vmatpush3.bf16.msra.mxu0 %v4283_v46 }
 0x6f9   : > { %4286 = vmatprep.subr.bf16.mxu0 %v4285_v12 }
 0x6fc   : > { %4288 = vmatpush3.bf16.msra.mxu0 %v4287_v53 }
 0x7c6   : > { %v3441_v45 = vpop.f32.mrb[14].mxu0 }
 0x7c7   : > { %v3442_v51 = vadd.f32 %v3944_v44, %v3441_v45  ;;  %v4212_v55 = vpop.f32.mrb[15].mxu0  ;;  %v3654_v44 = vld [vmem:[%s5648_s13 + $0xb8] sm:$0xff] }
 0x7c8   : > { %v4289_v45 = vpack.c.bf16 %v3654_v44, %v3653_v54  ;;  %v3638_v55 = vld [vmem:[%s5648_s13 + $0x38] sm:$0xff] }
 0x7c9   : > { %v5368_v57 = vadd.f32 %v3442_v51, %v4884_v4  ;;  %v3478_v4 = vld [vmem:[%s5596_s12 + $0x18] sm:$0xff]  ;;  %v3637_v51 = vld [vmem:[%s5648_s13 + $0x30] sm:$0xff] }
 0x7ca   : > { %v4261_v60 = vpack.c.bf16 %v3478_v4, %v3476_v27  ;;  %4290 = vmatprep.subr.bf16.mxu0 %v4289_v45  ;;  %v3657_v4 = vld [vmem:[%s5648_s13 + $0xd0] sm:$0xff] }
 0x7cb   : > { %v3448_v59 = vsel %vm615_vm0, %v5368_v57, 0.0 }
 0x7cc   : > { %3449 = vadd.xlane.f32.xlu1 %v3448_v59  ;;  %4262 = vmatprep.subr.bf16.mxu1 %v4261_v60  ;;  %v4291_v59 = vpack.c.bf16 %v3638_v55, %v3637_v51  ;;  %v3658_v60 = vld [vmem:[%s5648_s13 + $0xd8] sm:$0xff] }
 0x7cd   : > { %4264 = vmatpush1.bf16.msra.mxu1 %v4263_v50  ;;  %v4297_v61 = vpack.c.bf16 %v3658_v60, %v3657_v4  ;;  %v3642_v50 = vld [vmem:[%s5648_s13 + $0x58] sm:$0xff] }
 0x7ce   : > { %4266 = vmatprep.subr.bf16.mxu1 %v4265_v2  ;;  %4292 = vmatpush3.bf16.msra.mxu0 %v4291_v59  ;;  %v4299_v0 = vpack.c.bf16 %v3642_v50, %v3641_v63  ;;  %v3660_v2 = vld [vmem:[%s5648_s13 + $0xe8] sm:$0xff] }
 0x7cf   : > { %v4301_v3 = vpack.c.bf16 %v3660_v2, %v3659_v56 }
 0x7d1   : > { %4268 = vmatpush1.bf16.msra.mxu1 %v4267_v8  ;;  %v3644_v8 = vld [vmem:[%s5648_s13 + $0x68] sm:$0xff] }
 0x7d2   : > { %4270 = vmatprep.subr.bf16.mxu1 %v4269_v9  ;;  %v4303_v16 = vpack.c.bf16 %v3644_v8, %v3643_v6  ;;  %v3662_v9 = vld [vmem:[%s5648_s13 + $0xf8] sm:$0xff] }
 0x7d3   : > { %v4305_v10 = vpack.c.bf16 %v3662_v9, %v3661_v23 }
 0x7d5   : > { %4272 = vmatpush1.bf16.msra.mxu1 %v4271_v13  ;;  %v3646_v13 = vld [vmem:[%s5648_s13 + $0x78] sm:$0xff] }
 0x7d6   : > { %4274 = vmatprep.subr.bf16.mxu1 %v4273_v19  ;;  %v4307_v15 = vpack.c.bf16 %v3646_v13, %v3645_v14  ;;  %v3491_v19 = vld [vmem:[%s5649_s16] sm:$0x3] }
 0x7d7   : > { %v3496_v21 = vrot.slane %v3491_v19, %v3495_v17  ;;  %v3949_v14 = vld [vmem:[%s5651_s10] ss:$0 sm:$0xff] }
 0x7d9   : > { %4276 = vmatpush1.bf16.msra.mxu1 %v4275_v22  ;;  %v3500_v22 = vrot.slane %v3491_v19, %v3499_v20 }
 0x859   : > { %v3450_v58 = vpop.xlane.xlu1 %3449 }
 0x85a   : > { %v3451_v41 = vmul.f32 0.015625, %v3450_v58  ;;  %v3655_v58 = vld [vmem:[%s5648_s13 + $0xc0] sm:$0xff] }
 0x85c   : > { %v3452_v62 = vsub.f32 %v5368_v57, %v3451_v41  ;;  %v3656_v41 = vld [vmem:[%s5648_s13 + $0xc8] sm:$0xff] }
 0x85e   : > { %v3453_v47 = vmul.f32 %v3452_v62, %v3452_v62 }
 0x860   : > { %v3454_v48 = vsel %vm615_vm0, %v3453_v47, 0.0  ;;  %v3639_v47 = vld [vmem:[%s5648_s13 + $0x40] sm:$0xff] }
 0x861   : > { %3455 = vadd.xlane.f32.xlu0 %v3454_v48  ;;  %v3640_v48 = vld [vmem:[%s5648_s13 + $0x48] sm:$0xff] }
 0x862   : > { %v4295_v27 = vpack.c.bf16 %v3640_v48, %v3639_v47 }
 0x8ee   : > { %v3456_v24 = vpop.xlane.xlu0 %3455 }
 0x8ef   : > { %v3457_v25 = vmul.f32 0.015625, %v3456_v24 }
 0x8f1   : > { %v3458_v26 = vadd.f32 1e-05, %v3457_v25 }
 0x8f3   : > { %4418 = vrsqrt.f32 %v3458_v26 }
 0x8fd   : > { %v4419_v28 = vpop.eup %4418 }
 0x8fe   : > { %v3460_v30 = vmul.f32 %v4419_v28, %v3452_v62  ;;  %v4293_v62 = vpack.c.bf16 %v3656_v41, %v3655_v58 }
 0x900   : > { %v3467_v32 = vmul.f32 %v3946_v29, %v3460_v30  ;;  %4294 = vmatprep.subr.bf16.mxu0 %v4293_v62 }
 0x901   : > { %4296 = vmatpush3.bf16.msra.mxu0 %v4295_v27 }
 0x902   : > { %v3474_v33 = vadd.f32 %v3947_v31, %v3467_v32  ;;  %4298 = vmatprep.subr.bf16.mxu0 %v4297_v61 }
 0x904   : > { %3948 = vmatmul.mubr.msk.f32.vlgmr.msra.gmra.mrb[24].mxu1 %vm615_vm0, %v3474_v33 }
 0x905   : > { %4300 = vmatpush3.bf16.msra.mxu0 %v4299_v0 }
 0x906   : > { %4302 = vmatprep.subr.bf16.mxu0 %v4301_v3 }
 0x909   : > { %4304 = vmatpush3.bf16.msra.mxu0 %v4303_v16 }
 0x90a   : > { %4306 = vmatprep.subr.bf16.mxu0 %v4305_v10 }
 0x90d   : > { %4308 = vmatpush3.bf16.msra.mxu0 %v4307_v15 }
 0x9d7   : > { %v3572_v24 = vpop.f32.mrb[24].mxu1 }
 0x9d8   : > { %v3573_v25 = vadd.f32 %v3572_v24, %v3496_v21  ;;  %v3574_v26 = vpop.f32.mrb[25].mxu1 }
 0x9d9   : > { %v3575_v28 = vadd.f32 %v3574_v26, %v3500_v22 }
 0x9da   : > { %v3579_v29 = vmul.f32 0.70710677, %v3573_v25  ;;  %v3577_v16 = vmul.f32 0.5, %v3573_v25 }
 0x9db   : > { %v3580_v30 = vmul.f32 0.70710677, %v3575_v28  ;;  %v3578_v6 = vmul.f32 0.5, %v3575_v28 }
 0x9dc   : > { %v3581_v31 = vand.u32 2147483647, %v3579_v29  ;;  %vm3621_vm9 = vcmp.lt.f32.partialorder %v3579_v29, 0.0 }
 0x9dd   : > { %v3582_v32 = vand.u32 2147483647, %v3580_v30  ;;  %vm3622_vm10 = vcmp.lt.f32.partialorder %v3580_v30, 0.0 }
 0x9de   : > { %v3583_v33 = vmul.f32 0.3275911, %v3581_v31  ;;  %v3609_v37 = vsub.f32 0.0, %v3581_v31 }
 0x9df   : > { %v3584_v34 = vmul.f32 0.3275911, %v3582_v32  ;;  %v3610_v38 = vsub.f32 0.0, %v3582_v32 }
 0x9e0   : > { %v3585_v35 = vadd.f32 1.0, %v3583_v33  ;;  %v3611_v7 = vmul.f32 %v3609_v37, %v3581_v31 }
 0x9e1   : > { %v3586_v36 = vadd.f32 1.0, %v3584_v34  ;;  %v3612_v18 = vmul.f32 %v3610_v38, %v3582_v32 }
 0x9e2   : > { %4420 = vrcp.f32 %v3585_v35  ;;  %v3613_v46 = vmul.f32 1.442695, %v3611_v7 }
 0x9e3   : > { %4422 = vrcp.f32 %v3586_v36  ;;  %v3615_v12 = vmul.f32 1.442695, %v3612_v18 }
 0x9e4   : > { %4424 = vpow2.f32 %v3613_v46 }
 0x9e5   : > { %4426 = vpow2.f32 %v3615_v12 }
 0x9ec   : > { %v4421_v11 = vpop.eup %4420 }
 0x9ed   : > { %v4423_v39 = vpop.eup %4422  ;;  %v3591_v40 = vmul.f32 1.0614054, %v4421_v11 }
 0x9ee   : > { %v3592_v42 = vmul.f32 1.0614054, %v4423_v39  ;;  %v4425_v47 = vpop.eup %4424 }
 0x9ef   : > { %v3593_v43 = vadd.f32 -1.4531521, %v3591_v40  ;;  %v4427_v27 = vpop.eup %4426 }
 0x9f0   : > { %v3594_v1 = vadd.f32 -1.4531521, %v3592_v42 }
 0x9f1   : > { %v3595_v5 = vmul.f32 %v4421_v11, %v3593_v43 }
 0x9f2   : > { %v3596_v49 = vmul.f32 %v4423_v39, %v3594_v1 }
 0x9f3   : > { %v3597_v52 = vadd.f32 1.4214138, %v3595_v5 }
 0x9f4   : > { %v3598_v53 = vadd.f32 1.4214138, %v3596_v49 }
 0x9f5   : > { %v3599_v54 = vmul.f32 %v4421_v11, %v3597_v52 }
 0x9f6   : > { %v3600_v44 = vmul.f32 %v4423_v39, %v3598_v53 }
 0x9f7   : > { %v3601_v45 = vadd.f32 -0.28449672, %v3599_v54 }
 0x9f8   : > { %v3602_v51 = vadd.f32 -0.28449672, %v3600_v44 }
 0x9f9   : > { %v3603_v55 = vmul.f32 %v4421_v11, %v3601_v45 }
 0x9fa   : > { %v3604_v59 = vmul.f32 %v4423_v39, %v3602_v51 }
 0x9fb   : > { %v3605_v58 = vadd.f32 0.2548296, %v3603_v55 }
 0x9fc   : > { %v3606_v41 = vadd.f32 0.2548296, %v3604_v59 }
 0x9fd   : > { %v3607_v62 = vmul.f32 %v4421_v11, %v3605_v58 }
 0x9fe   : > { %v3608_v48 = vmul.f32 %v4423_v39, %v3606_v41 }
 0x9ff   : > { %v3617_v4 = vmul.f32 %v4425_v47, %v3607_v62 }
 0xa00   : > { %v3618_v60 = vmul.f32 %v4427_v27, %v3608_v48 }
 0xa01   : > { %v3619_v61 = vsub.f32 1.0, %v3617_v4 }
 0xa02   : > { %v3620_v63 = vsub.f32 1.0, %v3618_v60 }
 0xa03   : > { %v3623_v50 = vsub.f32 0.0, %v3619_v61 }
 0xa04   : > { %v3624_v0 = vsub.f32 0.0, %v3620_v63 }
 0xa05   : > { %v3625_v56 = vsel %vm3621_vm9, %v3623_v50, %v3619_v61 }
 0xa06   : > { %v3627_v2 = vadd.f32 1.0, %v3625_v56  ;;  %v3626_v3 = vsel %vm3622_vm10, %v3624_v0, %v3620_v63 }
 0xa07   : > { %v3628_v8 = vadd.f32 1.0, %v3626_v3 }
 0xa08   : > { %v3629_v9 = vmul.f32 %v3627_v2, %v3577_v16 }
 0xa09   : > { %v3630_v23 = vmul.f32 %v3628_v8, %v3578_v6 }
 0xa0b   : > { %3734 = vmatprep.mubr.f32.mxu0 %v3630_v23 }
 0xa0c   : > { %3735 = vmatmul.mubr.f32.vlgmr.msra.gmra.mrb[16].mxu0 %v3629_v9 }
 0xadf   : > { %v4054_v10 = vpop.f32.mrb[16].mxu0 }
 0xae0   : > { %v4055_v13 = vpop.f32.mrb[17].mxu0 }
 0xae1   : > { %v4056_v15 = vadd.f32 %v4055_v13, %v4054_v10 }
 0xae3   : > { %v3737_v17 = vadd.f32 %v4056_v15, %v3949_v14 }
 0xae5   : > { %v3740_v19 = vadd.f32 %v3737_v17, %v5368_v57 }
 0xae7   : > { %3741 = vst.msk [vmem:[%s607_s15] sm:$0xff] %vm615_vm0, %v3740_v19 }
 0xae8   : > { %4531 = shalt.err (!%p4528_p8)
}
 0xae9   : > { %s4532_s17 = scalar_lea.hbm %s5539_s21, 128  ;;  %s4536_s14 = scalar_lea.hbm %s5653_s0, 256 }
 0xaea   : > { %p4533_p13 = scmp.ne.s32.totalorder %s5539_s21, %s4532_s17  ;;  %p4537_p3 = scmp.lt.u32.totalorder %s5539_s21, %s5653_s0 }
 0xaeb   : > { %p4538_p4 = scmp.lt.u32.totalorder %s4536_s14, %s4532_s17  ;;  %p4540_p10 = scmp.lt.u32.totalorder %s4532_s17, %s5539_s21 }
 0xaec   : > { %p4534_p11 = pnand %p4533_p13, %p5654_p5 }
 0xaed   : > { %p4539_p2 = por %p4538_p4, %p4537_p3 }
 0xaee   : > { %p4535_p1 = pneg %p4534_p11 }
 0xaef   : > { %p4541_p7 = por %p4540_p10, %p4539_p2 }
 0xaf1   : > { %p4542_p9 = pnand %p4541_p7, %p4535_p1 }
 0xaf3   : > { %4545 = shalt.err (!%p4542_p9)
}
 0xaf4   : > { %4315 = dma.vmem_to_hbm [thread:$0]  (%p5654_p5), %s5541_s19, 128, %s5539_s21, %s3743_s1  }
 0xaf5 PF: > { %s5655_s15 = sld [smem:[#allocation12_spill]]  ;;  %s5656_s26 = sld [smem:[#allocation18_spill]] }
 0xaf6   : > { %s5657_s27 = sld [smem:[#allocation14_spill]] }
 0xafb   : > { %s3768_s24 = sand.u32 1, %s5655_s15   ;;  %p5658_p6 = scmp.ne.s32.totalorder %s5656_s26, 0 }
 0xafc   : > { %p5659_p12 = scmp.ge.s32.totalorder %s5657_s27, 2  ;;  %s3769_s30 = scalar_lea.sflag [#allocation4], %s3768_s24 }
 0xafe   : > { %p4328_p0 = pnand %p5659_p12, %p5658_p6 }
 0xb00   : > { %4571 = dma.done.wait (!%p4328_p0), %s3769_s30, 128  }
 0xb01   : > { %4573 = vsyncadd (!%p4328_p0), %s3769_s30, 4294967168  ;;  %s5660_s24 = sld [smem:[#allocation15_spill]]  ;;  %s5661_s25 = sld [smem:[#allocation13_spill]] }
 0xb02   : > { %s5662_s23 = sld [smem:[#allocation16_spill]]  ;;  %s5663_s21 = smov %s4580_s22 }
 0xb07   : > { %p32_p8 = scmp.ge.s32.totalorder %s5660_s24, 4   ;;  %s5664_s22 = smov %s5661_s25 }
 0xb09   :  { %34 = sbr.rel (!%p32_p8) target bundleno = 16 (0x10), region = 153 }
 0xb10   :  { %3774 = vsyncpa [#allocation3], 1 }
 0xb11   :  { %3776 = vsyncpa [#allocation3 + $0x1], 1 }
 0xb12   :  { %3777 = vsyncpa [#allocation6], 1 }
 0xb13   :  { %3779 = vsyncpa [#allocation6 + $0x1], 1 }
 0xb14   :  { %3780 = vsyncpa [#allocation4], 1 }
 0xb15   :  { %3782 = vsyncpa [#allocation4 + $0x1], 1 }

</bundles_post_ra>
